<compile_context>
chip_gen: v7x
topology: tpu7x:2x2x1
jax: 0.10.0
libtpu: 0.0.40
codegen_flags: <defaults>
</compile_context>

<pallas_src>
import functools

import jax
import jax.numpy as jnp
from jax.experimental import pallas as pl
from jax.experimental.pallas import tpu as pltpu


# ----------------------------------------------------------------------------- helpers

def _round_up(x, m):
    return ((x + m - 1) // m) * m


def _vmem():
    return pl.BlockSpec(memory_space=pltpu.MemorySpace.VMEM)


def _pad_gate_cols(w, h_log, h_pad):
    """(.., 4*h_log) -> (.., 4*h_pad): each LSTM gate block zero-padded to h_pad lanes."""
    parts = []
    for k in range(4):
        g = w[..., k * h_log:(k + 1) * h_log]
        pad = [(0, 0)] * (w.ndim - 1) + [(0, h_pad - h_log)]
        parts.append(jnp.pad(g, pad))
    return jnp.concatenate(parts, axis=-1)


def _pad_rows(w, rows_pad):
    return jnp.pad(w, ((0, rows_pad - w.shape[0]), (0, 0)))


# ----------------------------------------------------------------------------- Pallas kernels

def _dense_bias_kernel(x_ref, w_ref, b_ref, o_ref):
    o_ref[...] = (jnp.dot(x_ref[...], w_ref[...], preferred_element_type=jnp.float32)
                  + b_ref[...])


def pallas_dense_bias(x, w, b):
    """Single-block lane-dense matmul + bias (hoisted x @ W_ih projections, bias folded)."""
    M = x.shape[0]
    N = w.shape[1]
    return pl.pallas_call(
        _dense_bias_kernel,
        out_shape=jax.ShapeDtypeStruct((M, N), jnp.float32),
        in_specs=[_vmem(), _vmem(), _vmem()],
        out_specs=_vmem(),
    )(x, w, b)


def _enc_bilstm_kernel(xp_ref, whh_ref, len_ref, hfin_ref, cfin_ref):
    """One LSTM direction per grid step (grid=(2,)); the T-step recurrence is an in-kernel
    fori_loop.  xp already contains x @ W_ih + bias.  PyTorch gate order (i, f, g, o)."""
    d = pl.program_id(0)                       # 0 = forward, 1 = backward
    T = xp_ref.shape[0]
    Bp = len_ref.shape[0]
    Hp = whh_ref.shape[0]
    lens = len_ref[...]                        # (Bp, 1) int32

    def step(t, carry):
        h, c = carry
        actual_t = d * (T - 1 - t) + (1 - d) * t
        gates = xp_ref[actual_t] + jnp.dot(h, whh_ref[...],
                                           preferred_element_type=jnp.float32)
        i = jax.nn.sigmoid(gates[:, 0 * Hp:1 * Hp])
        f = jax.nn.sigmoid(gates[:, 1 * Hp:2 * Hp])
        g = jnp.tanh(gates[:, 2 * Hp:3 * Hp])
        o = jax.nn.sigmoid(gates[:, 3 * Hp:4 * Hp])
        c_new = f * c + i * g
        h_new = o * jnp.tanh(c_new)
        # pack_padded_sequence-equivalent masking: rows only update while actual_t < length.
        valid = lens > actual_t
        return (jnp.where(valid, h_new, h), jnp.where(valid, c_new, c))

    h0 = jnp.zeros((Bp, Hp), jnp.float32)
    c0 = jnp.zeros((Bp, Hp), jnp.float32)
    hT, cT = jax.lax.fori_loop(0, T, step, (h0, c0))
    hfin_ref[...] = hT
    cfin_ref[...] = cT


def pallas_bilstm_encoder(xp, whh, lengths):
    """xp: (T, Bp, 8Hp) projections (+bias) for both directions, whh: (2, Hp, 4Hp),
    lengths: (Bp, 1) int32.  Returns final h, c per direction: (2, Bp, Hp) each."""
    T, Bp, _ = xp.shape
    Hp = whh.shape[1]
    return pl.pallas_call(
        _enc_bilstm_kernel,
        out_shape=(jax.ShapeDtypeStruct((2, Bp, Hp), jnp.float32),
                   jax.ShapeDtypeStruct((2, Bp, Hp), jnp.float32)),
        grid_spec=pltpu.PrefetchScalarGridSpec(
            num_scalar_prefetch=0,
            grid=(2,),
            in_specs=[
                # direction selected via the lane-block index: no HBM transpose of xp.
                pl.BlockSpec((T, Bp, 4 * Hp), lambda d: (0, 0, d)),
                pl.BlockSpec((None, Hp, 4 * Hp), lambda d: (d, 0, 0)),
                pl.BlockSpec((Bp, 1), lambda d: (0, 0)),
            ],
            out_specs=(
                pl.BlockSpec((None, Bp, Hp), lambda d: (d, 0, 0)),
                pl.BlockSpec((None, Bp, Hp), lambda d: (d, 0, 0)),
            )),
        compiler_params=pltpu.CompilerParams(
            dimension_semantics=("parallel",)),        # the 2 directions -> 2 TCs on v7x
    )(xp, whh, lengths)


def _dec_teacher_kernel(xp_ref, whh_ref, whead_ref, bhead_ref, h0_ref, c0_ref,
                        out_ref, *, n_class, n_xy):
    """Whole teacher-forced decode in one invocation: S-step fori_loop fusing the LSTM cell
    and the packed [class | xy log-softmax | sigmoid(w,h)] head block."""
    S = xp_ref.shape[0]
    Bp, Dp = h0_ref.shape
    HT = out_ref.shape[-1]
    lane = jax.lax.broadcasted_iota(jnp.int32, (Bp, HT), 1)
    cls_lane = lane < n_class
    xy_lane = (lane >= n_class) & (lane < n_class + n_xy)
    wh_lane = (lane >= n_class + n_xy) & (lane < n_class + n_xy + 2)

    def step(t, carry):
        h, c = carry
        gates = xp_ref[t] + jnp.dot(h, whh_ref[...], preferred_element_type=jnp.float32)
        i = jax.nn.sigmoid(gates[:, 0 * Dp:1 * Dp])
        f = jax.nn.sigmoid(gates[:, 1 * Dp:2 * Dp])
        g = jnp.tanh(gates[:, 2 * Dp:3 * Dp])
        o = jax.nn.sigmoid(gates[:, 3 * Dp:4 * Dp])
        c_new = f * c + i * g
        h_new = o * jnp.tanh(c_new)

        heads = (jnp.dot(h_new, whead_ref[...], preferred_element_type=jnp.float32)
                 + bhead_ref[...])
        xy_masked = jnp.where(xy_lane, heads, jnp.float32(-1e30))
        m = jnp.max(xy_masked, axis=-1, keepdims=True)
        lse = jnp.log(jnp.sum(jnp.exp(xy_masked - m), axis=-1, keepdims=True)) + m
        out = jnp.where(cls_lane, heads,
              jnp.where(xy_lane, heads - lse,
              jnp.where(wh_lane, jax.nn.sigmoid(heads), jnp.float32(0.0))))
        out_ref[t] = out
        return (h_new, c_new)

    jax.lax.fori_loop(0, S, step, (h0_ref[...], c0_ref[...]))


def pallas_decoder_teacher(xp, whh, wheads, bheads, h0, c0, *, n_class, n_xy, head_pad):
    S, Bp, _ = xp.shape
    kernel = functools.partial(_dec_teacher_kernel, n_class=n_class, n_xy=n_xy)
    return pl.pallas_call(
        kernel,
        out_shape=jax.ShapeDtypeStruct((S, Bp, head_pad), jnp.float32),
        in_specs=[_vmem()] * 6,
        out_specs=_vmem(),
    )(xp, whh, wheads, bheads, h0, c0)


def _dec_greedy_kernel(eproj_ref, cproj_ref, bias_ref, whh_ref, whead_ref, bhead_ref,
                       h0_ref, c0_ref, out_ref, *, n_class, n_xy, xy_dist):
    """Fully fused autoregressive decode: one-hot embedding matmul, input projection,
    LSTM cell, heads, greedy argmax and xy-bin -> coordinate decode in one in-kernel loop.
    TODO(synk): torch.multinomial over exp(xy_out / temperature) replaced by greedy argmax."""
    S = out_ref.shape[0]
    Bp, Dp = h0_ref.shape
    HT = out_ref.shape[-1]
    LVP = eproj_ref.shape[0]

    voc_lane = jax.lax.broadcasted_iota(jnp.float32, (Bp, LVP), 1)
    head_lane = jax.lax.broadcasted_iota(jnp.int32, (Bp, HT), 1)
    coord_lane = jax.lax.broadcasted_iota(jnp.int32, (Bp, 8), 1)
    lane_f = head_lane.astype(jnp.float32)
    cls_lane = head_lane < n_class
    xy_lane = (head_lane >= n_class) & (head_lane < n_class + n_xy)
    wh_lane = (head_lane >= n_class + n_xy) & (head_lane < n_class + n_xy + 2)

    def step(t, carry):
        h, c, label, coords = carry
        onehot = (voc_lane == label).astype(jnp.float32)            # embedding lookup
        xp = (jnp.dot(onehot, eproj_ref[...], preferred_element_type=jnp.float32)
              + jnp.dot(coords, cproj_ref[...], preferred_element_type=jnp.float32)
              + bias_ref[...])
        gates = xp + jnp.dot(h, whh_ref[...], preferred_element_type=jnp.float32)
        i = jax.nn.sigmoid(gates[:, 0 * Dp:1 * Dp])
        f = jax.nn.sigmoid(gates[:, 1 * Dp:2 * Dp])
        g = jnp.tanh(gates[:, 2 * Dp:3 * Dp])
        o = jax.nn.sigmoid(gates[:, 3 * Dp:4 * Dp])
        c_new = f * c + i * g
        h_new = o * jnp.tanh(c_new)

        heads = (jnp.dot(h_new, whead_ref[...], preferred_element_type=jnp.float32)
                 + bhead_ref[...])
        sig_all = jax.nn.sigmoid(heads)
        xy_masked = jnp.where(xy_lane, heads, jnp.float32(-1e30))
        m = jnp.max(xy_masked, axis=-1, keepdims=True)
        lse = jnp.log(jnp.sum(jnp.exp(xy_masked - m), axis=-1, keepdims=True)) + m

        # greedy argmax (first max lane) kept fully 2-D / float to stay VPU+XLU friendly
        cls_masked = jnp.where(cls_lane, heads, jnp.float32(-1e30))
        cls_max = jnp.max(cls_masked, axis=-1, keepdims=True)
        top1 = jnp.min(jnp.where(cls_lane & (cls_masked >= cls_max), lane_f,
                                 jnp.float32(1e9)), axis=-1, keepdims=True)        # (Bp,1)
        xy_top = jnp.min(jnp.where(xy_lane & (xy_masked >= m), lane_f,
                                   jnp.float32(1e9)), axis=-1, keepdims=True) \
            - jnp.float32(n_class)                                                 # (Bp,1)
        y_bin = jnp.floor(xy_top / xy_dist)
        x_bin = xy_top - y_bin * xy_dist
        xv = x_bin / xy_dist
        yv = y_bin / xy_dist
        wv = jnp.sum(jnp.where(head_lane == n_class + n_xy, sig_all, 0.0),
                     axis=-1, keepdims=True)
        hv = jnp.sum(jnp.where(head_lane == n_class + n_xy + 1, sig_all, 0.0),
                     axis=-1, keepdims=True)

        out = jnp.where(cls_lane, heads,
              jnp.where(xy_lane, heads - lse,
              jnp.where(wh_lane, sig_all,
              jnp.where(head_lane == n_class + n_xy + 2, xv,
              jnp.where(head_lane == n_class + n_xy + 3, yv, jnp.float32(0.0))))))
        out_ref[t] = out

        coords_new = jnp.where(coord_lane == 0, xv,
                     jnp.where(coord_lane == 1, yv,
                     jnp.where(coord_lane == 2, wv,
                     jnp.where(coord_lane == 3, hv, jnp.float32(0.0)))))
        return (h_new, c_new, top1, coords_new)

    label0 = jnp.ones((Bp, 1), jnp.float32)        # trg_l starts at 1 (like PyTorch)
    coords0 = jnp.zeros((Bp, 8), jnp.float32)
    jax.lax.fori_loop(0, S, step, (h0_ref[...], c0_ref[...], label0, coords0))


def pallas_decoder_greedy(eproj, cproj, bias, whh, wheads, bheads, h0, c0,
                          *, n_steps, n_class, n_xy, xy_dist, head_pad):
    Bp = h0.shape[0]
    kernel = functools.partial(_dec_greedy_kernel, n_class=n_class, n_xy=n_xy,
                               xy_dist=xy_dist)
    return pl.pallas_call(
        kernel,
        out_shape=jax.ShapeDtypeStruct((n_steps, Bp, head_pad), jnp.float32),
        in_specs=[_vmem()] * 8,
        out_specs=_vmem(),
    )(eproj, cproj, bias, whh, wheads, bheads, h0, c0)


# ----------------------------------------------------------------------------- parameters

def init_params(key, cap_vocab, enc_embed, enc_hidden, label_vocab, dec_embed, xy_dist):
    ks = jax.random.split(key, 16)

    def u(k, shape, scale=0.1):
        return (jax.random.uniform(k, shape, jnp.float32) - 0.5) * 2.0 * scale

    dec_hidden = 2 * enc_hidden          # _cat_directions concatenates the two directions
    dec_in = dec_embed + 4               # [label embedding, x, y, w, h]
    # TODO(synk): PyTorch LSTM has separate b_ih / b_hh; a single merged bias is used here.
    return {
        'enc_embed': u(ks[0], (cap_vocab, enc_embed)),
        'enc_f_wih': u(ks[1], (enc_embed, 4 * enc_hidden)),
        'enc_f_whh': u(ks[2], (enc_hidden, 4 * enc_hidden)),
        'enc_f_b':   u(ks[3], (1, 4 * enc_hidden)),
        'enc_b_wih': u(ks[4], (enc_embed, 4 * enc_hidden)),
        'enc_b_whh': u(ks[5], (enc_hidden, 4 * enc_hidden)),
        'enc_b_b':   u(ks[6], (1, 4 * enc_hidden)),
        'dec_embed': u(ks[7], (label_vocab, dec_embed)),
        'dec_wih':   u(ks[8], (dec_in, 4 * dec_hidden)),
        'dec_whh':   u(ks[9], (dec_hidden, 4 * dec_hidden)),
        'dec_b':     u(ks[10], (1, 4 * dec_hidden)),
        'w_class':   u(ks[11], (dec_hidden, label_vocab)),
        'b_class':   u(ks[12], (1, label_vocab)),
        'w_xy':      u(ks[13], (dec_hidden, xy_dist * xy_dist)),
        'b_xy':      u(ks[14], (1, xy_dist * xy_dist)),
        'w_wh':      u(ks[15], (dec_hidden, 2)),
        'b_wh':      jnp.zeros((1, 2), jnp.float32),
    }


# ----------------------------------------------------------------------------- Seq2Seq forward

def seq2seq_forward(params, captions_padded, captions_length,
                    target_l, target_x, target_y, target_w, target_h,
                    *, pad_token=0, is_training=True, teacher_learning=True,
                    xy_distribution_size=4, enc_hidden=32, temperature=0.4):
    del temperature  # TODO(synk): only consumed by torch.multinomial sampling (not replicated)

    f32 = jnp.float32
    B, T = captions_padded.shape
    trg_len = target_l.shape[1]
    S = trg_len - 1
    H = enc_hidden
    Hp = _round_up(max(H, 128), 128)          # per-direction padded hidden (lane-aligned gates)
    Dp = _round_up(max(2 * H, 128), 128)      # decoder padded hidden
    Bp = _round_up(max(B, 8), 8)              # padded batch (sublanes)
    L = params['w_class'].shape[1]
    XY = xy_distribution_size ** 2
    # ONE lane-dense head block: [class(L) | xy(XY) | wh(2) | xy-coords(2, greedy only)]
    HT = _round_up(max(L + XY + 4, 128), 128)

    # ---- pad parameters to tile-aligned layouts (exact: padded lanes carry zeros) ----------
    enc_whh = jnp.stack(
        [_pad_rows(_pad_gate_cols(params['enc_f_whh'], H, Hp), Hp),
         _pad_rows(_pad_gate_cols(params['enc_b_whh'], H, Hp), Hp)], axis=0)      # (2,Hp,4Hp)
    enc_wih_cat = jnp.concatenate(
        [_pad_gate_cols(params['enc_f_wih'], H, Hp),
         _pad_gate_cols(params['enc_b_wih'], H, Hp)], axis=1)                     # (E,8Hp)
    enc_bias_cat = jnp.concatenate(
        [_pad_gate_cols(params['enc_f_b'], H, Hp),
         _pad_gate_cols(params['enc_b_b'], H, Hp)], axis=1)                       # (1,8Hp)

    dec_wih = _pad_gate_cols(params['dec_wih'], 2 * H, Dp)                        # (dec_in,4Dp)
    dec_whh = _pad_rows(_pad_gate_cols(params['dec_whh'], 2 * H, Dp), Dp)         # (Dp,4Dp)
    dec_bias = _pad_gate_cols(params['dec_b'], 2 * H, Dp)                         # (1,4Dp)

    w_heads = jnp.zeros((Dp, HT), f32)
    w_heads = w_heads.at[:2 * H, 0:L].set(params['w_class'])
    w_heads = w_heads.at[:2 * H, L:L + XY].set(params['w_xy'])
    w_heads = w_heads.at[:2 * H, L + XY:L + XY + 2].set(params['w_wh'])
    b_heads = jnp.zeros((1, HT), f32)
    b_heads = b_heads.at[:, 0:L].set(params['b_class'])
    b_heads = b_heads.at[:, L:L + XY].set(params['b_xy'])
    b_heads = b_heads.at[:, L + XY:L + XY + 2].set(params['b_wh'])

    # ---- encoder: hoisted x @ W_ih (+ folded bias) + per-direction fused recurrence --------
    emb = params['enc_embed'][captions_padded.T]                                  # (T,B,E)
    emb = jnp.pad(emb, ((0, 0), (0, Bp - B), (0, 0)))                             # (T,Bp,E)
    xp_enc = pallas_dense_bias(emb.reshape(T * Bp, -1), enc_wih_cat,
                               enc_bias_cat).reshape(T, Bp, 8 * Hp)               # no transpose
    lengths = jnp.pad(captions_length.astype(jnp.int32), (0, Bp - B)).reshape(Bp, 1)

    hfin, cfin = pallas_bilstm_encoder(xp_enc, enc_whh, lengths)

    # TODO(synk): per-timestep encoder_output (decoder attention input) is unused by this
    # forward and intentionally not materialized (dead output removed per perf review).

    # _cat_directions: (2,B,H) -> (B,2H), then zero-pad to the decoder's Dp lanes.
    dec_h0 = jnp.pad(jnp.concatenate([hfin[0, :, :H], hfin[1, :, :H]], axis=1),
                     ((0, 0), (0, Dp - 2 * H)))
    dec_c0 = jnp.pad(jnp.concatenate([cfin[0, :, :H], cfin[1, :, :H]], axis=1),
                     ((0, 0), (0, Dp - 2 * H)))

    if is_training and teacher_learning:
        # Teacher forcing: all decoder inputs are known up-front -> hoist the input projection
        # (+ bias) and run the entire decode as ONE fused pallas_call.
        in_l = jnp.concatenate([jnp.ones((1, B), jnp.int32),
                                target_l[:, 1:trg_len - 1].T.astype(jnp.int32)], axis=0)
        zrow = jnp.zeros((1, B), f32)
        in_x = jnp.concatenate([zrow, target_x[:, 1:trg_len - 1].T], axis=0)
        in_y = jnp.concatenate([zrow, target_y[:, 1:trg_len - 1].T], axis=0)
        in_w = jnp.concatenate([zrow, target_w[:, 1:trg_len - 1].T], axis=0)
        in_h = jnp.concatenate([zrow, target_h[:, 1:trg_len - 1].T], axis=0)
        in_l = jnp.pad(in_l, ((0, 0), (0, Bp - B)))
        coords = jnp.pad(jnp.stack([in_x, in_y, in_w, in_h], axis=-1),
                         ((0, 0), (0, Bp - B), (0, 0)))                            # (S,Bp,4)
        # TODO(synk): one-hot next_l is built in PyTorch but consumed only inside the
        # (external) decoder module; only next_xy is consumed here.
        x_in = jnp.concatenate([params['dec_embed'][in_l], coords], axis=-1)       # (S,Bp,dec_in)
        xp_dec = pallas_dense_bias(x_in.reshape(S * Bp, -1), dec_wih,
                                   dec_bias).reshape(S, Bp, 4 * Dp)

        heads_seq = pallas_decoder_teacher(xp_dec, dec_whh, w_heads, b_heads,
                                           dec_h0, dec_c0,
                                           n_class=L, n_xy=XY, head_pad=HT)
        class_seq = heads_seq[:, :B, 0:L]                   # (S,B,L)   raw class logits
        xy_out_seq = heads_seq[:, :B, L:L + XY]             # (S,B,XY)  log-softmax
        wh_out_seq = heads_seq[:, :B, L + XY:L + XY + 2]    # (S,B,2)   sigmoid
        # teacher-forced xy coords consumed at step di are (target_x[:,di], target_y[:,di])
        xy_coords_seq = jnp.stack([target_x[:, 1:].T, target_y[:, 1:].T], axis=-1)  # (S,B,2)
    else:
        # Fully fused autoregressive decode (one kernel; greedy argmax instead of sampling).
        dec_e = params['dec_embed'].shape[1]
        LVP = _round_up(max(L, 128), 128)
        eproj = jnp.zeros((LVP, 4 * Dp), f32).at[:L, :].set(
            jnp.dot(params['dec_embed'], dec_wih[:dec_e]))                          # (LVP,4Dp)
        cproj = jnp.zeros((8, 4 * Dp), f32).at[:4, :].set(dec_wih[dec_e:dec_e + 4])  # (8,4Dp)

        heads_seq = pallas_decoder_greedy(eproj, cproj, dec_bias, dec_whh,
                                          w_heads, b_heads, dec_h0, dec_c0,
                                          n_steps=S, n_class=L, n_xy=XY,
                                          xy_dist=xy_distribution_size, head_pad=HT)
        class_seq = heads_seq[:, :B, 0:L]
        xy_out_seq = heads_seq[:, :B, L:L + XY]
        wh_out_seq = heads_seq[:, :B, L + XY:L + XY + 2]
        xy_coords_seq = heads_seq[:, :B, L + XY + 2:L + XY + 4]

    # ---- assemble outputs (index 0 stays zero, like the PyTorch loop starting at di=1) ------
    outputs_class = jnp.concatenate([jnp.zeros((1, B, L), f32), class_seq], axis=0)
    outputs_bbox_xy = jnp.concatenate([jnp.zeros((1, B, XY), f32), xy_out_seq], axis=0)
    bbox_steps = jnp.concatenate([xy_coords_seq, wh_out_seq], axis=-1)             # (S,B,4)
    outputs_bbox = jnp.concatenate([jnp.zeros((1, B, 4), f32), bbox_steps], axis=0)

    if is_training:
        top1_seq = jnp.argmax(class_seq, axis=-1)                                  # (S,B)
        tgt = target_l[:, 1:].T.astype(jnp.int32)
        non_pad = tgt != pad_token
        l_match = jnp.sum(jnp.where(non_pad, top1_seq == tgt, False)).astype(jnp.int32)
        total = jnp.sum(non_pad).astype(jnp.int32)
    else:
        l_match = jnp.zeros((), jnp.int32)
        total = jnp.zeros((), jnp.int32)

    return {'output_class': outputs_class,
            'output_bbox': outputs_bbox,
            'outputs_bbox_xy': outputs_bbox_xy,
            'l_match': l_match,
            'total': total}


seq2seq_forward_jit = jax.jit(
    seq2seq_forward,
    static_argnames=('pad_token', 'is_training', 'teacher_learning',
                     'xy_distribution_size', 'enc_hidden', 'temperature'))


# ----------------------------------------------------------------------------- main

if __name__ == "__main__":
    key = jax.random.PRNGKey(0)
    B, T = 2, 8                 # batch, caption sequence length
    CAP_VOCAB = 20              # caption vocab size (encoder)
    ENC_EMBED, ENC_H = 16, 32   # encoder embedding / hidden (per direction)
    LABEL_VOCAB = 10            # self.output_l_size (decoder class vocab)
    DEC_EMBED = 16
    XY_DIST = 4                 # decoder.xy_distribution_size -> xy_out has 16 bins
    TRG_LEN = 6                 # target sequence length
    PAD = 0

    k_cap, k_l, k_x, k_y, k_w, k_h, k_p = jax.random.split(key, 7)
    captions_padded = jax.random.randint(k_cap, (B, T), 1, CAP_VOCAB).astype(jnp.int32)
    captions_length = jnp.full((B,), T, dtype=jnp.int32)
    target_l = jax.random.randint(k_l, (B, TRG_LEN), 0, LABEL_VOCAB).astype(jnp.int32)
    target_x = jax.random.uniform(k_x, (B, TRG_LEN), jnp.float32)
    target_y = jax.random.uniform(k_y, (B, TRG_LEN), jnp.float32)
    target_w = jax.random.uniform(k_w, (B, TRG_LEN), jnp.float32)
    target_h = jax.random.uniform(k_h, (B, TRG_LEN), jnp.float32)

    params = init_params(k_p, CAP_VOCAB, ENC_EMBED, ENC_H, LABEL_VOCAB, DEC_EMBED, XY_DIST)

    out = seq2seq_forward_jit(params, captions_padded, captions_length,
                              target_l, target_x, target_y, target_w, target_h,
                              pad_token=PAD, is_training=True, teacher_learning=True,
                              xy_distribution_size=XY_DIST, enc_hidden=ENC_H)

    jax.block_until_ready(out)
    assert out['output_class'].shape == (TRG_LEN, B, LABEL_VOCAB)
    assert out['output_bbox'].shape == (TRG_LEN, B, 4)
    assert out['outputs_bbox_xy'].shape == (TRG_LEN, B, XY_DIST * XY_DIST)
    assert int(out['total']) == int(jnp.sum(target_l[:, 1:] != PAD))
    assert int(out['l_match']) <= int(out['total'])
    print("KERNEL_OK")
</pallas_src>

<mosaic_0001>
module attributes {stable_mosaic.version = 11 : i64} {
  func.func @_dense_bias_kernel(%arg0: memref<64x16xf32, #tpu.memory_space<vmem>>, %arg1: memref<16x1024xf32, #tpu.memory_space<vmem>>, %arg2: memref<1x1024xf32, #tpu.memory_space<vmem>>, %arg3: memref<64x1024xf32, #tpu.memory_space<vmem>>) attributes {dimension_semantics = [], scalar_prefetch = 0 : i64, scratch_operands = 0 : i64, tpu.core_type = #tpu.core_type<tc>} {
    %c0 = arith.constant 0 : index
    %c0_0 = arith.constant 0 : index
    %0 = vector.load %arg0[%c0, %c0_0] : memref<64x16xf32, #tpu.memory_space<vmem>>, vector<64x16xf32>
    %c0_1 = arith.constant 0 : index
    %c0_2 = arith.constant 0 : index
    %1 = vector.load %arg1[%c0_1, %c0_2] : memref<16x1024xf32, #tpu.memory_space<vmem>>, vector<16x1024xf32>
    %cst = arith.constant dense<0.000000e+00> : vector<64x1024xf32>
    %2 = tpu.matmul %0, %1, %cst {dimension_numbers = #tpu.dot_dimension_numbers<[1], [0], [0], [1], [0, 0, 1, 1], [], []>} : vector<64x16xf32>, vector<16x1024xf32>, vector<64x1024xf32> -> vector<64x1024xf32>
    %c0_3 = arith.constant 0 : index
    %c0_4 = arith.constant 0 : index
    %3 = vector.load %arg2[%c0_3, %c0_4] : memref<1x1024xf32, #tpu.memory_space<vmem>>, vector<1x1024xf32>
    %4 = vector.broadcast %3 : vector<1x1024xf32> to vector<64x1024xf32>
    %5 = arith.addf %2, %4 : vector<64x1024xf32>
    %c0_5 = arith.constant 0 : index
    %c0_6 = arith.constant 0 : index
    %6 = vector.load %arg3[%c0_5, %c0_6] : memref<64x1024xf32, #tpu.memory_space<vmem>>, vector<64x1024xf32>
    tpu.vector_store %arg3[%c0_5, %c0_6], %5 {strides = array<i32>} : memref<64x1024xf32, #tpu.memory_space<vmem>>, vector<64x1024xf32>,
    return
  }
}

module attributes {stable_mosaic.version = 11 : i64} {
  func.func @_enc_bilstm_kernel(%arg0: i32, %arg1: memref<8x8x512xf32, #tpu.memory_space<vmem>>, %arg2: memref<1x128x512xf32, #tpu.memory_space<vmem>>, %arg3: memref<8x1xi32, #tpu.memory_space<vmem>>, %arg4: memref<1x8x128xf32, #tpu.memory_space<vmem>>, %arg5: memref<1x8x128xf32, #tpu.memory_space<vmem>>) attributes {dimension_semantics = [#tpu.dimension_semantics<parallel>], iteration_bounds = array<i64: 2>, scalar_prefetch = 0 : i64, scratch_operands = 0 : i64, tpu.core_type = #tpu.core_type<tc>, window_params = [{transform_indices = @transform_0, window_bounds = array<i64: 8, 8, 512>}, {transform_indices = @transform_1, window_bounds = array<i64: 1, 128, 512>}, {pipeline_mode = #tpu.pipeline_mode<synchronous>, transform_indices = @transform_2, window_bounds = array<i64: 8, 1>}, {transform_indices = @transform_3, window_bounds = array<i64: 1, 8, 128>}, {transform_indices = @transform_4, window_bounds = array<i64: 1, 8, 128>}]} {
    %c0 = arith.constant 0 : index
    %c0_0 = arith.constant 0 : index
    %0 = vector.load %arg3[%c0, %c0_0] : memref<8x1xi32, #tpu.memory_space<vmem>>, vector<8x1xi32>
    %cst = arith.constant 0.000000e+00 : f32
    %1 = vector.broadcast %cst : f32 to vector<8x128xf32>
    %cst_1 = arith.constant 0.000000e+00 : f32
    %2 = vector.broadcast %cst_1 : f32 to vector<8x128xf32>
    %c0_i32 = arith.constant 0 : i32
    %c8_i32 = arith.constant 8 : i32
    %3 = arith.addi %c0_i32, %c8_i32 : i32
    %c1_i32 = arith.constant 1 : i32
    %4:2 = scf.for %arg6 = %c0_i32 to %3 step %c1_i32 iter_args(%arg7 = %1, %arg8 = %2) -> (vector<8x128xf32>, vector<8x128xf32>)  : i32 {
      %c7_i32 = arith.constant 7 : i32
      %11 = arith.subi %c7_i32, %arg6 : i32
      %12 = arith.muli %arg0, %11 : i32
      %c1_i32_9 = arith.constant 1 : i32
      %13 = arith.subi %c1_i32_9, %arg0 : i32
      %14 = arith.muli %13, %arg6 : i32
      %15 = arith.addi %12, %14 : i32
      %16 = arith.index_cast %15 : i32 to index
      %c0_10 = arith.constant 0 : index
      %c0_11 = arith.constant 0 : index
      %17 = vector.load %arg1[%16, %c0_10, %c0_11] : memref<8x8x512xf32, #tpu.memory_space<vmem>>, vector<1x8x512xf32>
      %18 = vector.shape_cast %17 : vector<1x8x512xf32> to vector<8x512xf32>
      %c0_12 = arith.constant 0 : index
      %c0_13 = arith.constant 0 : index
      %c0_14 = arith.constant 0 : index
      %19 = vector.load %arg2[%c0_12, %c0_13, %c0_14] : memref<1x128x512xf32, #tpu.memory_space<vmem>>, vector<1x128x512xf32>
      %20 = vector.shape_cast %19 : vector<1x128x512xf32> to vector<128x512xf32>
      %cst_15 = arith.constant dense<0.000000e+00> : vector<8x512xf32>
      %21 = tpu.matmul %arg7, %20, %cst_15 {dimension_numbers = #tpu.dot_dimension_numbers<[1], [0], [0], [1], [0, 0, 1, 1], [], []>} : vector<8x128xf32>, vector<128x512xf32>, vector<8x512xf32> -> vector<8x512xf32>
      %22 = arith.addf %18, %21 : vector<8x512xf32>
      %23 = vector.extract_strided_slice %22 {offsets = [0, 0], sizes = [8, 128], strides = [1, 1]} : vector<8x512xf32> to vector<8x128xf32>
      %24 = arith.negf %23 : vector<8x128xf32>
      %25 = math.exp %24 : vector<8x128xf32>
      %cst_16 = arith.constant 1.000000e+00 : f32
      %26 = vector.broadcast %cst_16 : f32 to vector<8x128xf32>
      %27 = arith.addf %26, %25 : vector<8x128xf32>
      %28 = arith.divf %26, %27 : vector<8x128xf32>
      %29 = vector.extract_strided_slice %22 {offsets = [0, 128], sizes = [8, 128], strides = [1, 1]} : vector<8x512xf32> to vector<8x128xf32>
      %30 = arith.negf %29 : vector<8x128xf32>
      %31 = math.exp %30 : vector<8x128xf32>
      %cst_17 = arith.constant 1.000000e+00 : f32
      %32 = vector.broadcast %cst_17 : f32 to vector<8x128xf32>
      %33 = arith.addf %32, %31 : vector<8x128xf32>
      %34 = arith.divf %32, %33 : vector<8x128xf32>
      %35 = vector.extract_strided_slice %22 {offsets = [0, 256], sizes = [8, 128], strides = [1, 1]} : vector<8x512xf32> to vector<8x128xf32>
      %36 = math.tanh %35 : vector<8x128xf32>
      %37 = vector.extract_strided_slice %22 {offsets = [0, 384], sizes = [8, 128], strides = [1, 1]} : vector<8x512xf32> to vector<8x128xf32>
      %38 = arith.negf %37 : vector<8x128xf32>
      %39 = math.exp %38 : vector<8x128xf32>
      %cst_18 = arith.constant 1.000000e+00 : f32
      %40 = vector.broadcast %cst_18 : f32 to vector<8x128xf32>
      %41 = arith.addf %40, %39 : vector<8x128xf32>
      %42 = arith.divf %40, %41 : vector<8x128xf32>
      %43 = arith.mulf %34, %arg8 : vector<8x128xf32>
      %44 = arith.mulf %28, %36 : vector<8x128xf32>
      %45 = arith.addf %43, %44 : vector<8x128xf32>
      %46 = math.tanh %45 : vector<8x128xf32>
      %47 = arith.mulf %42, %46 : vector<8x128xf32>
      %48 = vector.broadcast %15 : i32 to vector<8x1xi32>
      %49 = arith.cmpi sgt, %0, %48 : vector<8x1xi32>
      %50 = vector.shape_cast %49 : vector<8x1xi1> to vector<8x1xi1>
      %51 = vector.broadcast %50 : vector<8x1xi1> to vector<8x128xi1>
      %52 = arith.select %51, %47, %arg7 : vector<8x128xi1>, vector<8x128xf32>
      %53 = vector.shape_cast %49 : vector<8x1xi1> to vector<8x1xi1>
      %54 = vector.broadcast %53 : vector<8x1xi1> to vector<8x128xi1>
      %55 = arith.select %54, %45, %arg8 : vector<8x128xi1>, vector<8x128xf32>
      scf.yield %52, %55 : vector<8x128xf32>, vector<8x128xf32>
    }
    %c8_i32_2 = arith.constant 8 : i32
    %c0_3 = arith.constant 0 : index
    %c0_4 = arith.constant 0 : index
    %c0_5 = arith.constant 0 : index
    %5 = vector.load %arg4[%c0_3, %c0_4, %c0_5] : memref<1x8x128xf32, #tpu.memory_space<vmem>>, vector<1x8x128xf32>
    %6 = vector.shape_cast %5 : vector<1x8x128xf32> to vector<8x128xf32>
    %7 = vector.shape_cast %4#0 : vector<8x128xf32> to vector<1x8x128xf32>
    tpu.vector_store %arg4[%c0_3, %c0_4, %c0_5], %7 {strides = array<i32>} : memref<1x8x128xf32, #tpu.memory_space<vmem>>, vector<1x8x128xf32>,
    %c0_6 = arith.constant 0 : index
    %c0_7 = arith.constant 0 : index
    %c0_8 = arith.constant 0 : index
    %8 = vector.load %arg5[%c0_6, %c0_7, %c0_8] : memref<1x8x128xf32, #tpu.memory_space<vmem>>, vector<1x8x128xf32>
    %9 = vector.shape_cast %8 : vector<1x8x128xf32> to vector<8x128xf32>
    %10 = vector.shape_cast %4#1 : vector<8x128xf32> to vector<1x8x128xf32>
    tpu.vector_store %arg5[%c0_6, %c0_7, %c0_8], %10 {strides = array<i32>} : memref<1x8x128xf32, #tpu.memory_space<vmem>>, vector<1x8x128xf32>,
    return
  }
  func.func @transform_0(%arg0: i32) -> (i32, i32, i32) {
    %c0_i32 = arith.constant 0 : i32
    %c0_i32_0 = arith.constant 0 : i32
    %c0_i32_1 = arith.constant 0 : i32
    return %c0_i32, %c0_i32_0, %arg0 : i32, i32, i32
  }
  func.func @transform_1(%arg0: i32) -> (i32, i32, i32) {
    %c0_i32 = arith.constant 0 : i32
    %c0_i32_0 = arith.constant 0 : i32
    %c0_i32_1 = arith.constant 0 : i32
    return %arg0, %c0_i32, %c0_i32_0 : i32, i32, i32
  }
  func.func @transform_2(%arg0: i32) -> (i32, i32) {
    %c0_i32 = arith.constant 0 : i32
    %c0_i32_0 = arith.constant 0 : i32
    %c0_i32_1 = arith.constant 0 : i32
    return %c0_i32, %c0_i32_0 : i32, i32
  }
  func.func @transform_3(%arg0: i32) -> (i32, i32, i32) {
    %c0_i32 = arith.constant 0 : i32
    %c0_i32_0 = arith.constant 0 : i32
    %c0_i32_1 = arith.constant 0 : i32
    return %arg0, %c0_i32, %c0_i32_0 : i32, i32, i32
  }
  func.func @transform_4(%arg0: i32) -> (i32, i32, i32) {
    %c0_i32 = arith.constant 0 : i32
    %c0_i32_0 = arith.constant 0 : i32
    %c0_i32_1 = arith.constant 0 : i32
    return %arg0, %c0_i32, %c0_i32_0 : i32, i32, i32
  }
}

module attributes {stable_mosaic.version = 11 : i64} {
  func.func @_dense_bias_kernel(%arg0: memref<40x20xf32, #tpu.memory_space<vmem>>, %arg1: memref<20x512xf32, #tpu.memory_space<vmem>>, %arg2: memref<1x512xf32, #tpu.memory_space<vmem>>, %arg3: memref<40x512xf32, #tpu.memory_space<vmem>>) attributes {dimension_semantics = [], scalar_prefetch = 0 : i64, scratch_operands = 0 : i64, tpu.core_type = #tpu.core_type<tc>} {
    %c0 = arith.constant 0 : index
    %c0_0 = arith.constant 0 : index
    %0 = vector.load %arg0[%c0, %c0_0] : memref<40x20xf32, #tpu.memory_space<vmem>>, vector<40x20xf32>
    %c0_1 = arith.constant 0 : index
    %c0_2 = arith.constant 0 : index
    %1 = vector.load %arg1[%c0_1, %c0_2] : memref<20x512xf32, #tpu.memory_space<vmem>>, vector<20x512xf32>
    %cst = arith.constant dense<0.000000e+00> : vector<40x512xf32>
    %2 = tpu.matmul %0, %1, %cst {dimension_numbers = #tpu.dot_dimension_numbers<[1], [0], [0], [1], [0, 0, 1, 1], [], []>} : vector<40x20xf32>, vector<20x512xf32>, vector<40x512xf32> -> vector<40x512xf32>
    %c0_3 = arith.constant 0 : index
    %c0_4 = arith.constant 0 : index
    %3 = vector.load %arg2[%c0_3, %c0_4] : memref<1x512xf32, #tpu.memory_space<vmem>>, vector<1x512xf32>
    %4 = vector.broadcast %3 : vector<1x512xf32> to vector<40x512xf32>
    %5 = arith.addf %2, %4 : vector<40x512xf32>
    %c0_5 = arith.constant 0 : index
    %c0_6 = arith.constant 0 : index
    %6 = vector.load %arg3[%c0_5, %c0_6] : memref<40x512xf32, #tpu.memory_space<vmem>>, vector<40x512xf32>
    tpu.vector_store %arg3[%c0_5, %c0_6], %5 {strides = array<i32>} : memref<40x512xf32, #tpu.memory_space<vmem>>, vector<40x512xf32>,
    return
  }
}

module attributes {stable_mosaic.version = 11 : i64} {
  func.func @_dec_teacher_kernel(%arg0: memref<5x8x512xf32, #tpu.memory_space<vmem>>, %arg1: memref<128x512xf32, #tpu.memory_space<vmem>>, %arg2: memref<128x128xf32, #tpu.memory_space<vmem>>, %arg3: memref<1x128xf32, #tpu.memory_space<vmem>>, %arg4: memref<8x128xf32, #tpu.memory_space<vmem>>, %arg5: memref<8x128xf32, #tpu.memory_space<vmem>>, %arg6: memref<5x8x128xf32, #tpu.memory_space<vmem>>) attributes {dimension_semantics = [], scalar_prefetch = 0 : i64, scratch_operands = 0 : i64, tpu.core_type = #tpu.core_type<tc>} {
    %0 = tpu.iota {dimensions = array<i32: 1>} : vector<8x128xi32>
    %c10_i32 = arith.constant 10 : i32
    %1 = vector.broadcast %c10_i32 : i32 to vector<8x128xi32>
    %2 = arith.cmpi slt, %0, %1 : vector<8x128xi32>
    %c10_i32_0 = arith.constant 10 : i32
    %3 = vector.broadcast %c10_i32_0 : i32 to vector<8x128xi32>
    %4 = arith.cmpi sge, %0, %3 : vector<8x128xi32>
    %c26_i32 = arith.constant 26 : i32
    %5 = vector.broadcast %c26_i32 : i32 to vector<8x128xi32>
    %6 = arith.cmpi slt, %0, %5 : vector<8x128xi32>
    %7 = arith.andi %4, %6 : vector<8x128xi1>
    %c26_i32_1 = arith.constant 26 : i32
    %8 = vector.broadcast %c26_i32_1 : i32 to vector<8x128xi32>
    %9 = arith.cmpi sge, %0, %8 : vector<8x128xi32>
    %c28_i32 = arith.constant 28 : i32
    %10 = vector.broadcast %c28_i32 : i32 to vector<8x128xi32>
    %11 = arith.cmpi slt, %0, %10 : vector<8x128xi32>
    %12 = arith.andi %9, %11 : vector<8x128xi1>
    %c0 = arith.constant 0 : index
    %c0_2 = arith.constant 0 : index
    %13 = vector.load %arg4[%c0, %c0_2] : memref<8x128xf32, #tpu.memory_space<vmem>>, vector<8x128xf32>
    %c0_3 = arith.constant 0 : index
    %c0_4 = arith.constant 0 : index
    %14 = vector.load %arg5[%c0_3, %c0_4] : memref<8x128xf32, #tpu.memory_space<vmem>>, vector<8x128xf32>
    %c0_i32 = arith.constant 0 : i32
    %c5_i32 = arith.constant 5 : i32
    %15 = arith.addi %c0_i32, %c5_i32 : i32
    %c1_i32 = arith.constant 1 : i32
    %16:2 = scf.for %arg7 = %c0_i32 to %15 step %c1_i32 iter_args(%arg8 = %13, %arg9 = %14) -> (vector<8x128xf32>, vector<8x128xf32>)  : i32 {
      %17 = arith.index_cast %arg7 : i32 to index
      %c0_6 = arith.constant 0 : index
      %c0_7 = arith.constant 0 : index
      %18 = vector.load %arg0[%17, %c0_6, %c0_7] : memref<5x8x512xf32, #tpu.memory_space<vmem>>, vector<1x8x512xf32>
      %19 = vector.shape_cast %18 : vector<1x8x512xf32> to vector<8x512xf32>
      %c0_8 = arith.constant 0 : index
      %c0_9 = arith.constant 0 : index
      %20 = vector.load %arg1[%c0_8, %c0_9] : memref<128x512xf32, #tpu.memory_space<vmem>>, vector<128x512xf32>
      %cst = arith.constant dense<0.000000e+00> : vector<8x512xf32>
      %21 = tpu.matmul %arg8, %20, %cst {dimension_numbers = #tpu.dot_dimension_numbers<[1], [0], [0], [1], [0, 0, 1, 1], [], []>} : vector<8x128xf32>, vector<128x512xf32>, vector<8x512xf32> -> vector<8x512xf32>
      %22 = arith.addf %19, %21 : vector<8x512xf32>
      %23 = vector.extract_strided_slice %22 {offsets = [0, 0], sizes = [8, 128], strides = [1, 1]} : vector<8x512xf32> to vector<8x128xf32>
      %24 = arith.negf %23 : vector<8x128xf32>
      %25 = math.exp %24 : vector<8x128xf32>
      %cst_10 = arith.constant 1.000000e+00 : f32
      %26 = vector.broadcast %cst_10 : f32 to vector<8x128xf32>
      %27 = arith.addf %26, %25 : vector<8x128xf32>
      %28 = arith.divf %26, %27 : vector<8x128xf32>
      %29 = vector.extract_strided_slice %22 {offsets = [0, 128], sizes = [8, 128], strides = [1, 1]} : vector<8x512xf32> to vector<8x128xf32>
      %30 = arith.negf %29 : vector<8x128xf32>
      %31 = math.exp %30 : vector<8x128xf32>
      %cst_11 = arith.constant 1.000000e+00 : f32
      %32 = vector.broadcast %cst_11 : f32 to vector<8x128xf32>
      %33 = arith.addf %32, %31 : vector<8x128xf32>
      %34 = arith.divf %32, %33 : vector<8x128xf32>
      %35 = vector.extract_strided_slice %22 {offsets = [0, 256], sizes = [8, 128], strides = [1, 1]} : vector<8x512xf32> to vector<8x128xf32>
      %36 = math.tanh %35 : vector<8x128xf32>
      %37 = vector.extract_strided_slice %22 {offsets = [0, 384], sizes = [8, 128], strides = [1, 1]} : vector<8x512xf32> to vector<8x128xf32>
      %38 = arith.negf %37 : vector<8x128xf32>
      %39 = math.exp %38 : vector<8x128xf32>
      %cst_12 = arith.constant 1.000000e+00 : f32
      %40 = vector.broadcast %cst_12 : f32 to vector<8x128xf32>
      %41 = arith.addf %40, %39 : vector<8x128xf32>
      %42 = arith.divf %40, %41 : vector<8x128xf32>
      %43 = arith.mulf %34, %arg9 : vector<8x128xf32>
      %44 = arith.mulf %28, %36 : vector<8x128xf32>
      %45 = arith.addf %43, %44 : vector<8x128xf32>
      %46 = math.tanh %45 : vector<8x128xf32>
      %47 = arith.mulf %42, %46 : vector<8x128xf32>
      %c0_13 = arith.constant 0 : index
      %c0_14 = arith.constant 0 : index
      %48 = vector.load %arg2[%c0_13, %c0_14] : memref<128x128xf32, #tpu.memory_space<vmem>>, vector<128x128xf32>
      %cst_15 = arith.constant dense<0.000000e+00> : vector<8x128xf32>
      %49 = tpu.matmul %47, %48, %cst_15 {dimension_numbers = #tpu.dot_dimension_numbers<[1], [0], [0], [1], [0, 0, 1, 1], [], []>} : vector<8x128xf32>, vector<128x128xf32>, vector<8x128xf32> -> vector<8x128xf32>
      %c0_16 = arith.constant 0 : index
      %c0_17 = arith.constant 0 : index
      %50 = vector.load %arg3[%c0_16, %c0_17] : memref<1x128xf32, #tpu.memory_space<vmem>>, vector<1x128xf32>
      %51 = vector.broadcast %50 : vector<1x128xf32> to vector<8x128xf32>
      %52 = arith.addf %49, %51 : vector<8x128xf32>
      %cst_18 = arith.constant -1.000000e+30 : f32
      %53 = vector.broadcast %cst_18 : f32 to vector<8x128xf32>
      %54 = arith.select %7, %52, %53 : vector<8x128xi1>, vector<8x128xf32>
      %cst_19 = arith.constant dense<0xFF800000> : vector<8xf32>
      %55 = vector.multi_reduction <maximumf>, %54, %cst_19 [1] : vector<8x128xf32> to vector<8xf32>
      %56 = vector.shape_cast %55 : vector<8xf32> to vector<8x1xf32>
      %57 = vector.broadcast %56 : vector<8x1xf32> to vector<8x128xf32>
      %58 = arith.subf %54, %57 : vector<8x128xf32>
      %59 = math.exp %58 : vector<8x128xf32>
      %cst_20 = arith.constant dense<0.000000e+00> : vector<8xf32>
      %60 = vector.multi_reduction <add>, %59, %cst_20 [1] : vector<8x128xf32> to vector<8xf32>
      %61 = vector.shape_cast %60 : vector<8xf32> to vector<8x1xf32>
      %62 = math.log %61 : vector<8x1xf32>
      %63 = arith.addf %62, %56 : vector<8x1xf32>
      %64 = vector.broadcast %63 : vector<8x1xf32> to vector<8x128xf32>
      %65 = arith.subf %52, %64 : vector<8x128xf32>
      %66 = arith.negf %52 : vector<8x128xf32>
      %67 = math.exp %66 : vector<8x128xf32>
      %cst_21 = arith.constant 1.000000e+00 : f32
      %68 = vector.broadcast %cst_21 : f32 to vector<8x128xf32>
      %69 = arith.addf %68, %67 : vector<8x128xf32>
      %70 = arith.divf %68, %69 : vector<8x128xf32>
      %cst_22 = arith.constant 0.000000e+00 : f32
      %71 = vector.broadcast %cst_22 : f32 to vector<8x128xf32>
      %72 = arith.select %12, %70, %71 : vector<8x128xi1>, vector<8x128xf32>
      %73 = arith.select %7, %65, %72 : vector<8x128xi1>, vector<8x128xf32>
      %74 = arith.select %2, %52, %73 : vector<8x128xi1>, vector<8x128xf32>
      %75 = arith.index_cast %arg7 : i32 to index
      %c0_23 = arith.constant 0 : index
      %c0_24 = arith.constant 0 : index
      %76 = vector.load %arg6[%75, %c0_23, %c0_24] : memref<5x8x128xf32, #tpu.memory_space<vmem>>, vector<1x8x128xf32>
      %77 = vector.shape_cast %76 : vector<1x8x128xf32> to vector<8x128xf32>
      %78 = vector.shape_cast %74 : vector<8x128xf32> to vector<1x8x128xf32>
      tpu.vector_store %arg6[%75, %c0_23, %c0_24], %78 {strides = array<i32>} : memref<5x8x128xf32, #tpu.memory_space<vmem>>, vector<1x8x128xf32>,
      scf.yield %47, %45 : vector<8x128xf32>, vector<8x128xf32>
    }
    %c5_i32_5 = arith.constant 5 : i32
    return
  }
}

</mosaic_0001>

<bundles_post_ra>
// kernel: seq2seq_forward.5
= control target key start
LH: loop header
LB: loop body
LE: loop exit
PB: predicated region body
PF: predicated region fallthrough
CT: control target
= control target key end

     0   :  { %s921_s15 = smov 0   ;;  %s923_s16 = smov 0   ;;  %s1167_s0 = inlined_call_operand.vmem [shape: f32[8,8,1024], index: 0, kind: input, shape index: {}]   ;;  %s1168_s1 = inlined_call_operand.vmem [shape: f32[2,128,512], index: 1, kind: input, shape index: {}]   ;;  %s1169_s2 = inlined_call_operand.vmem [shape: s32[8,1], index: 2, kind: input, shape index: {}]   ;;  %s1170_s3 = inlined_call_operand.vmem [shape: f32[2,8,128], index: 3, kind: output, shape index: {0}]   ;;  %s1171_s4 = inlined_call_operand.vmem [shape: f32[2,8,128], index: 4, kind: output, shape index: {1}]  }
   0x1   :  { %s925_s17 = smov 0  }
   0x2 LB: > { %s937_s18 = sadd.s32 4294967295, %s880_s17   ;;  %s940_s19 = sadd.s32 1, %s880_s17   ;;  %s880_s17 = sphi %s925_s17, %s1176_s17   ;;  %s876_s16 = sphi %s923_s16, %s1175_s16   ;;  %s872_s15 = sphi %s921_s15, %s1174_s15  }
   0x3   : > { %s19_s20 = ssub.s32 %s880_s17, %s940_s19  ;;  %s22_s21 = sadd.s32 1, %s876_s16 }
   0x4   : > { %p20_p0 = scmp.eq.s32.totalorder %s19_s20, 0  ;;  %p29_p1 = scmp.ne.s32.totalorder %s876_s16, %s872_s15 }
   0x5   : > { %p30_p2 = scmp.eq.s32.totalorder %s880_s17, 0  ;;  %p695_p4 = scmp.ge.s32.totalorder %s880_s17, 2 }
   0x6   : > { %s949_s22 = scalar_select %p20_p0, %s876_s16, %s22_s21  }
   0x7   : > { %p31_p3 = por %p30_p2, %p29_p1  ;;  %157 = sbr.rel (%p695_p4) target bundleno = 34 (0x22), region = 20 }
   0xe   : > { %160 = sbr.rel (!%p31_p3) target bundleno = 34 (0x22), region = 24  ;;  %s162_s23 = sand.u32 (%p31_p3), 1, %s876_s16  }
   0xf   : > { %s712_s24 = sshll.u32 (%p31_p3), %s880_s17, 5  ;;  %s696_s25 = sshll.u32 (%p31_p3), %s162_s23, 8 }
  0x10   : > { %s957_s28 = scalar_lea.vmem (%p31_p3), %s1167_s0, %s712_s24  ;;  %s962_s29 = scalar_lea.vmem (%p31_p3), [#allocation2], %s696_s25 }
  0x11   : > { %v180_v0 = vld [vmem:[%s957_s28] sm:$0xff] (%p31_p3)  ;;  %v182_v1 = vld [vmem:[%s957_s28 + $0x8] sm:$0xff] (%p31_p3)  ;;  %v184_v2 = vld [vmem:[%s957_s28 + $0x10] sm:$0xff] (%p31_p3) }
  0x12   : > { %181 = vst [vmem:[%s962_s29] sm:$0xff] (%p31_p3), %v180_v0  ;;  %183 = vst [vmem:[%s962_s29 + $0x8] sm:$0xff] (%p31_p3), %v182_v1  ;;  %v186_v3 = vld [vmem:[%s957_s28 + $0x18] sm:$0xff] (%p31_p3)  ;;  %v188_v4 = vld [vmem:[%s957_s28 + $0x40] sm:$0xff] (%p31_p3) }
  0x13   : > { %185 = vst [vmem:[%s962_s29 + $0x10] sm:$0xff] (%p31_p3), %v184_v2  ;;  %v190_v5 = vld [vmem:[%s957_s28 + $0x48] sm:$0xff] (%p31_p3)  ;;  %187 = vst [vmem:[%s962_s29 + $0x18] sm:$0xff] (%p31_p3), %v186_v3  ;;  %v192_v6 = vld [vmem:[%s957_s28 + $0x50] sm:$0xff] (%p31_p3) }
  0x14   : > { %189 = vst [vmem:[%s962_s29 + $0x20] sm:$0xff] (%p31_p3), %v188_v4  ;;  %191 = vst [vmem:[%s962_s29 + $0x28] sm:$0xff] (%p31_p3), %v190_v5  ;;  %v194_v7 = vld [vmem:[%s957_s28 + $0x58] sm:$0xff] (%p31_p3)  ;;  %v196_v8 = vld [vmem:[%s957_s28 + $0x80] sm:$0xff] (%p31_p3) }
  0x15   : > { %193 = vst [vmem:[%s962_s29 + $0x30] sm:$0xff] %v192_v6  ;;  %195 = vst [vmem:[%s962_s29 + $0x38] sm:$0xff] %v194_v7  ;;  %v198_v9 = vld [vmem:[%s957_s28 + $0x88] sm:$0xff]  ;;  %v200_v10 = vld [vmem:[%s957_s28 + $0x90] sm:$0xff] }
  0x16   : > { %197 = vst [vmem:[%s962_s29 + $0x40] sm:$0xff] %v196_v8  ;;  %v202_v11 = vld [vmem:[%s957_s28 + $0x98] sm:$0xff]  ;;  %199 = vst [vmem:[%s962_s29 + $0x48] sm:$0xff] %v198_v9  ;;  %v204_v12 = vld [vmem:[%s957_s28 + $0xc0] sm:$0xff] }
  0x17   : > { %201 = vst [vmem:[%s962_s29 + $0x50] sm:$0xff] %v200_v10  ;;  %203 = vst [vmem:[%s962_s29 + $0x58] sm:$0xff] %v202_v11  ;;  %v206_v13 = vld [vmem:[%s957_s28 + $0xc8] sm:$0xff]  ;;  %v208_v14 = vld [vmem:[%s957_s28 + $0xd0] sm:$0xff] }
  0x18   : > { %205 = vst [vmem:[%s962_s29 + $0x60] sm:$0xff] %v204_v12  ;;  %207 = vst [vmem:[%s962_s29 + $0x68] sm:$0xff] %v206_v13  ;;  %v210_v15 = vld [vmem:[%s957_s28 + $0xd8] sm:$0xff]  ;;  %v212_v16 = vld [vmem:[%s957_s28 + $0x100] sm:$0xff] }
  0x19   : > { %209 = vst [vmem:[%s962_s29 + $0x70] sm:$0xff] %v208_v14  ;;  %v214_v17 = vld [vmem:[%s957_s28 + $0x108] sm:$0xff]  ;;  %211 = vst [vmem:[%s962_s29 + $0x78] sm:$0xff] %v210_v15  ;;  %v216_v18 = vld [vmem:[%s957_s28 + $0x110] sm:$0xff] }
  0x1a   : > { %213 = vst [vmem:[%s962_s29 + $0x80] sm:$0xff] %v212_v16  ;;  %215 = vst [vmem:[%s962_s29 + $0x88] sm:$0xff] %v214_v17  ;;  %v218_v19 = vld [vmem:[%s957_s28 + $0x118] sm:$0xff]  ;;  %v220_v20 = vld [vmem:[%s957_s28 + $0x140] sm:$0xff] }
  0x1b   : > { %217 = vst [vmem:[%s962_s29 + $0x90] sm:$0xff] %v216_v18  ;;  %219 = vst [vmem:[%s962_s29 + $0x98] sm:$0xff] %v218_v19  ;;  %v222_v21 = vld [vmem:[%s957_s28 + $0x148] sm:$0xff]  ;;  %v224_v22 = vld [vmem:[%s957_s28 + $0x150] sm:$0xff] }
  0x1c   : > { %221 = vst [vmem:[%s962_s29 + $0xa0] sm:$0xff] %v220_v20  ;;  %v226_v23 = vld [vmem:[%s957_s28 + $0x158] sm:$0xff]  ;;  %223 = vst [vmem:[%s962_s29 + $0xa8] sm:$0xff] %v222_v21  ;;  %v228_v24 = vld [vmem:[%s957_s28 + $0x180] sm:$0xff] }
  0x1d   : > { %225 = vst [vmem:[%s962_s29 + $0xb0] sm:$0xff] %v224_v22  ;;  %227 = vst [vmem:[%s962_s29 + $0xb8] sm:$0xff] %v226_v23  ;;  %v230_v25 = vld [vmem:[%s957_s28 + $0x188] sm:$0xff]  ;;  %v232_v26 = vld [vmem:[%s957_s28 + $0x190] sm:$0xff] }
  0x1e   : > { %229 = vst [vmem:[%s962_s29 + $0xc0] sm:$0xff] %v228_v24  ;;  %231 = vst [vmem:[%s962_s29 + $0xc8] sm:$0xff] %v230_v25  ;;  %v234_v27 = vld [vmem:[%s957_s28 + $0x198] sm:$0xff]  ;;  %v236_v28 = vld [vmem:[%s957_s28 + $0x1c0] sm:$0xff] }
  0x1f   : > { %233 = vst [vmem:[%s962_s29 + $0xd0] sm:$0xff] %v232_v26  ;;  %v238_v29 = vld [vmem:[%s957_s28 + $0x1c8] sm:$0xff]  ;;  %235 = vst [vmem:[%s962_s29 + $0xd8] sm:$0xff] %v234_v27  ;;  %v240_v30 = vld [vmem:[%s957_s28 + $0x1d0] sm:$0xff] }
  0x20   : > { %237 = vst [vmem:[%s962_s29 + $0xe0] sm:$0xff] %v236_v28  ;;  %239 = vst [vmem:[%s962_s29 + $0xe8] sm:$0xff] %v238_v29  ;;  %v242_v31 = vld [vmem:[%s957_s28 + $0x1d8] sm:$0xff] }
  0x21   : > { %241 = vst [vmem:[%s962_s29 + $0xf0] sm:$0xff] %v240_v30  ;;  %243 = vst [vmem:[%s962_s29 + $0xf8] sm:$0xff] %v242_v31 }
  0x22 PF: > { %p699_p5 = scmp.ge.s32.totalorder %s880_s17, 1  ;;  %p256_p6 = scmp.lt.s32.totalorder %s880_s17, 3 }
  0x24   : > { %p257_p7 = pnand %p699_p5, %p256_p6 }
  0x25   : > { %s263_s30 = sand.u32 (!%p257_p7), 1, %s872_s15   ;;  %p297_p8 = scmp.lt.s32.totalorder (!%p257_p7), %s937_s18, 1  ;;  %v1032_v32 = vld [vmem:[%s1169_s2] sm:$0xff] (!%p257_p7)  ;;  %v1053_v33 = vmov (!%p257_p7), 0.0   ;;  %v1055_v34 = vmov (!%p257_p7), 0.0  }
  0x26   : > { %260 = sbr.rel (%p257_p7) target bundleno = 346 (0x15a), region = 51  ;;  %s1034_s7 = sshll.u32 (!%p257_p7), %s263_s30, 8 }
  0x27   : > { %s265_s24 = scalar_lea.vmem (!%p257_p7), [#allocation2], %s1034_s7  ;;  %s1057_s25 = smov (!%p257_p7), 0  }
  0x2d   : > { %s298_s8 = scalar_select %p297_p8, %s937_s18, 1 }
  0x2f   : > { %s713_s9 = sshll.u32 %s298_s8, 9  ;;  %s703_s10 = sshll.u32 %s298_s8, 3 }
  0x30   : > { %s1040_s13 = scalar_lea.vmem %s1168_s1, %s713_s9  ;;  %s1045_s15 = scalar_lea.vmem %s1170_s3, %s703_s10 }
  0x31   : > { %s1050_s23 = scalar_lea.vmem %s1171_s4, %s703_s10 }
  0x32 LB: >> { %v332_v35 = vld [vmem:[%s1040_s13 + $0x8] sm:$0xff]  ;;  %v331_v37 = vld [vmem:[%s1040_s13] sm:$0xff]  ;;  %s321_s26 = ssub.s32 1, %s937_s18  ;;  %v894_v42 = vmov 0.0   ;;  %v895_v48 = vmov 0   ;;  %s319_s27 = ssub.s32 7, %s892_s25  ;;  %s892_s25 = sphi %s1057_s25, %s316_s25   ;;  %v888_v34 = vphi %v1055_v34, %v1173_v34   ;;  %v884_v33 = vphi %v1053_v33, %v1172_v33  }
  0x33   : >> { %v336_v36 = vld [vmem:[%s1040_s13 + $0x28] sm:$0xff]  ;;  %v335_v39 = vld [vmem:[%s1040_s13 + $0x20] sm:$0xff]  ;;  %459 = vmatprep.mubr.f32.mxu0 %v894_v42  ;;  %530 = vmatprep.mubr.f32.mxu1 %v894_v42  ;;  %s322_s28 = smul.u32 %s892_s25, %s321_s26  ;;  %v334_v55 = vld [vmem:[%s1040_s13 + $0x18] sm:$0xff]  ;;  %s316_s25 = sadd.s32 1, %s892_s25  }
  0x34   : >> { %v715_v38 = vpack.c.bf16 %v336_v36, %v332_v35  ;;  %v340_v40 = vld [vmem:[%s1040_s13 + $0x48] sm:$0xff]  ;;  %v717_v43 = vpack.c.bf16 %v335_v39, %v331_v37  ;;  %v339_v45 = vld [vmem:[%s1040_s13 + $0x40] sm:$0xff]  ;;  %829 = vset.pattern.permute.xlu0 %v895_v48  ;;  %s320_s29 = smul.u32 %s937_s18, %s319_s27  ;;  %v338_v56 = vld [vmem:[%s1040_s13 + $0x38] sm:$0xff]  ;;  %p313_p9 = scmp.ge.s32.totalorder %s316_s25, 8  }
  0x35   : >> { %v344_v41 = vld [vmem:[%s1040_s13 + $0x68] sm:$0xff]  ;;  %v343_v46 = vld [vmem:[%s1040_s13 + $0x60] sm:$0xff]  ;;  %v747_v58 = vpack.c.bf16 %v338_v56, %v334_v55  ;;  %v333_v59 = vld [vmem:[%s1040_s13 + $0x10] sm:$0xff] }
  0x36   : >> { %v719_v44 = vpack.c.bf16 %v344_v41, %v340_v40  ;;  %v348_v47 = vld [vmem:[%s1040_s13 + $0x88] sm:$0xff]  ;;  %716 = vmatprep.subr.bf16.mxu0 %v715_v38  ;;  %v721_v50 = vpack.c.bf16 %v343_v46, %v339_v45  ;;  %v347_v51 = vld [vmem:[%s1040_s13 + $0x80] sm:$0xff]  ;;  %s1087_s30 = sadd.s32 %s322_s28, %s320_s29  ;;  %v337_v60 = vld [vmem:[%s1040_s13 + $0x30] sm:$0xff] }
  0x37   : >> { %v352_v49 = vld [vmem:[%s1040_s13 + $0xa8] sm:$0xff]  ;;  %718 = vmatpush1.bf16.msra.mxu0 %v717_v43  ;;  %v351_v52 = vld [vmem:[%s1040_s13 + $0xa0] sm:$0xff]  ;;  %v565_v61 = vstv %s1087_s30  ;;  %v749_v62 = vpack.c.bf16 %v337_v60, %v333_v59  ;;  %748 = vmatprep.subr.bf16.mxu1 %v747_v58  ;;  %v342_v0 = vld [vmem:[%s1040_s13 + $0x58] sm:$0xff]  ;;  %s714_s5 = sshll.u32 %s1087_s30, 5 }
  0x38   : >> { %720 = vmatprep.subr.bf16.mxu0 %v719_v44  ;;  %v723_v53 = vpack.c.bf16 %v352_v49, %v348_v47  ;;  %v356_v54 = vld [vmem:[%s1040_s13 + $0xc8] sm:$0xff]  ;;  %vm566_vm0 = vcmp.gt.s32.totalorder %v1032_v32, %v565_v61  ;;  %v725_v63 = vpack.c.bf16 %v351_v52, %v347_v51  ;;  %v346_v1 = vld [vmem:[%s1040_s13 + $0x78] sm:$0xff]  ;;  %v341_v2 = vld [vmem:[%s1040_s13 + $0x50] sm:$0xff]  ;;  %s326_s6 = scalar_lea.vmem %s265_s24, %s714_s5 [#allocation2] }
  0x39   : >> { %v360_v57 = vld [vmem:[%s1040_s13 + $0xe8] sm:$0xff]  ;;  %v567_v3 = vsel %vm566_vm0, 1, %v895_v48  ;;  %v355_v5 = vld [vmem:[%s1040_s13 + $0xc0] sm:$0xff]  ;;  %750 = vmatpush1.bf16.msra.mxu1 %v749_v62  ;;  %v751_v7 = vpack.c.bf16 %v346_v1, %v342_v0  ;;  %v345_v8 = vld [vmem:[%s1040_s13 + $0x70] sm:$0xff] }
  0x3a   : >> { %v727_v4 = vpack.c.bf16 %v360_v57, %v356_v54  ;;  %v359_v6 = vld [vmem:[%s1040_s13 + $0xe0] sm:$0xff]  ;;  %v364_v9 = vld [vmem:[%s1040_s13 + $0x108] sm:$0xff]  ;;  %v753_v11 = vpack.c.bf16 %v345_v8, %v341_v2  ;;  %v350_v12 = vld [vmem:[%s1040_s13 + $0x98] sm:$0xff]  ;;  %569 = vperm.xlu0 %829, %v567_v3  }
  0x3b   : >> { %722 = vmatpush1.bf16.msra.mxu0 %v721_v50  ;;  %v368_v10 = vld [vmem:[%s1040_s13 + $0x128] sm:$0xff]  ;;  %752 = vmatprep.subr.bf16.mxu1 %v751_v7  ;;  %v354_v13 = vld [vmem:[%s1040_s13 + $0xb8] sm:$0xff]  ;;  %v349_v14 = vld [vmem:[%s1040_s13 + $0x90] sm:$0xff]  ;;  %v729_v16 = vpack.c.bf16 %v359_v6, %v355_v5 }
  0x3c   : >> { %724 = vmatprep.subr.bf16.mxu0 %v723_v53  ;;  %v353_v15 = vld [vmem:[%s1040_s13 + $0xb0] sm:$0xff]  ;;  %v363_v17 = vld [vmem:[%s1040_s13 + $0x100] sm:$0xff]  ;;  %v755_v19 = vpack.c.bf16 %v354_v13, %v350_v12  ;;  %v731_v20 = vpack.c.bf16 %v368_v10, %v364_v9  ;;  %v372_v21 = vld [vmem:[%s1040_s13 + $0x148] sm:$0xff] }
  0x3d   : >> { %v367_v18 = vld [vmem:[%s1040_s13 + $0x120] sm:$0xff]  ;;  %754 = vmatpush1.bf16.msra.mxu1 %v753_v11  ;;  %v757_v22 = vpack.c.bf16 %v353_v15, %v349_v14  ;;  %v358_v23 = vld [vmem:[%s1040_s13 + $0xd8] sm:$0xff]  ;;  %v376_v25 = vld [vmem:[%s1040_s13 + $0x168] sm:$0xff] }
  0x3e   : >> { %v362_v24 = vld [vmem:[%s1040_s13 + $0xf8] sm:$0xff]  ;;  %756 = vmatprep.subr.bf16.mxu1 %v755_v19  ;;  %v357_v27 = vld [vmem:[%s1040_s13 + $0xd0] sm:$0xff]  ;;  %v733_v29 = vpack.c.bf16 %v367_v18, %v363_v17  ;;  %v735_v35 = vpack.c.bf16 %v376_v25, %v372_v21  ;;  %v371_v36 = vld [vmem:[%s1040_s13 + $0x140] sm:$0xff] }
  0x3f   : >> { %726 = vmatpush1.bf16.msra.mxu0 %v725_v63  ;;  %v759_v26 = vpack.c.bf16 %v362_v24, %v358_v23  ;;  %v361_v28 = vld [vmem:[%s1040_s13 + $0xf0] sm:$0xff]  ;;  %v366_v30 = vld [vmem:[%s1040_s13 + $0x118] sm:$0xff]  ;;  %v375_v37 = vld [vmem:[%s1040_s13 + $0x160] sm:$0xff] }
  0x40   : >> { %728 = vmatprep.subr.bf16.mxu0 %v727_v4  ;;  %v370_v31 = vld [vmem:[%s1040_s13 + $0x138] sm:$0xff]  ;;  %v380_v38 = vld [vmem:[%s1040_s13 + $0x188] sm:$0xff]  ;;  %v761_v39 = vpack.c.bf16 %v361_v28, %v357_v27  ;;  %v365_v42 = vld [vmem:[%s1040_s13 + $0x110] sm:$0xff]  ;;  %v737_v46 = vpack.c.bf16 %v375_v37, %v371_v36 }
  0x41   : >> { %758 = vmatpush1.bf16.msra.mxu1 %v757_v22  ;;  %v384_v40 = vld [vmem:[%s1040_s13 + $0x1a8] sm:$0xff]  ;;  %v763_v41 = vpack.c.bf16 %v370_v31, %v366_v30  ;;  %v369_v43 = vld [vmem:[%s1040_s13 + $0x130] sm:$0xff]  ;;  %v374_v44 = vld [vmem:[%s1040_s13 + $0x158] sm:$0xff] }
  0x42   : >> { %760 = vmatprep.subr.bf16.mxu1 %v759_v26  ;;  %v378_v45 = vld [vmem:[%s1040_s13 + $0x178] sm:$0xff]  ;;  %v739_v47 = vpack.c.bf16 %v384_v40, %v380_v38  ;;  %v379_v48 = vld [vmem:[%s1040_s13 + $0x180] sm:$0xff]  ;;  %v388_v50 = vld [vmem:[%s1040_s13 + $0x1c8] sm:$0xff]  ;;  %v765_v51 = vpack.c.bf16 %v369_v43, %v365_v42 }
  0x43   : >> { %730 = vmatpush1.bf16.msra.mxu0 %v729_v16  ;;  %v383_v49 = vld [vmem:[%s1040_s13 + $0x1a0] sm:$0xff]  ;;  %v392_v52 = vld [vmem:[%s1040_s13 + $0x1e8] sm:$0xff]  ;;  %v767_v53 = vpack.c.bf16 %v378_v45, %v374_v44  ;;  %v373_v54 = vld [vmem:[%s1040_s13 + $0x150] sm:$0xff] }
  0x44   : >> { %732 = vmatprep.subr.bf16.mxu0 %v731_v20  ;;  %v377_v55 = vld [vmem:[%s1040_s13 + $0x170] sm:$0xff]  ;;  %v382_v56 = vld [vmem:[%s1040_s13 + $0x198] sm:$0xff]  ;;  %v741_v58 = vpack.c.bf16 %v383_v49, %v379_v48  ;;  %v743_v59 = vpack.c.bf16 %v392_v52, %v388_v50  ;;  %v387_v60 = vld [vmem:[%s1040_s13 + $0x1c0] sm:$0xff] }
  0x45   : >> { %762 = vmatpush1.bf16.msra.mxu1 %v761_v39  ;;  %v386_v57 = vld [vmem:[%s1040_s13 + $0x1b8] sm:$0xff]  ;;  %v391_v61 = vld [vmem:[%s1040_s13 + $0x1e0] sm:$0xff]  ;;  %v769_v62 = vpack.c.bf16 %v377_v55, %v373_v54  ;;  %v381_v0 = vld [vmem:[%s1040_s13 + $0x190] sm:$0xff] }
  0x46   : >> { %764 = vmatprep.subr.bf16.mxu1 %v763_v41  ;;  %v771_v63 = vpack.c.bf16 %v386_v57, %v382_v56  ;;  %v385_v1 = vld [vmem:[%s1040_s13 + $0x1b0] sm:$0xff]  ;;  %v390_v2 = vld [vmem:[%s1040_s13 + $0x1d8] sm:$0xff]  ;;  %v745_v4 = vpack.c.bf16 %v391_v61, %v387_v60  ;;  %v327_v10 = vld [vmem:[%s326_s6] sm:$0xff] }
  0x47   : >> { %734 = vmatpush1.bf16.msra.mxu0 %v733_v29  ;;  %v394_v3 = vld [vmem:[%s1040_s13 + $0x1f8] sm:$0xff]  ;;  %v773_v5 = vpack.c.bf16 %v385_v1, %v381_v0  ;;  %v389_v7 = vld [vmem:[%s1040_s13 + $0x1d0] sm:$0xff]  ;;  %v328_v11 = vld [vmem:[%s326_s6 + $0x8] sm:$0xff] }
  0x48   : >> { %736 = vmatprep.subr.bf16.mxu0 %v735_v35  ;;  %v775_v6 = vpack.c.bf16 %v394_v3, %v390_v2  ;;  %v393_v8 = vld [vmem:[%s1040_s13 + $0x1f0] sm:$0xff]  ;;  %v330_v19 = vld [vmem:[%s326_s6 + $0x18] sm:$0xff] }
  0x49   : >> { %766 = vmatpush1.bf16.msra.mxu1 %v765_v51  ;;  %v777_v9 = vpack.c.bf16 %v393_v8, %v389_v7  ;;  %v329_v17 = vld [vmem:[%s326_s6 + $0x10] sm:$0xff] }
  0x4a   : >> { %768 = vmatprep.subr.bf16.mxu1 %v767_v53 }
  0x4b   : >> { %738 = vmatpush1.bf16.msra.mxu0 %v737_v46 }
  0x4c   : >> { %740 = vmatprep.subr.bf16.mxu0 %v739_v47 }
  0x4d   : >> { %770 = vmatpush1.bf16.msra.mxu1 %v769_v62 }
  0x4e   : >> { %772 = vmatprep.subr.bf16.mxu1 %v771_v63 }
  0x4f   : >> { %742 = vmatpush1.bf16.msra.mxu0 %v741_v58 }
  0x50   : >> { %744 = vmatprep.subr.bf16.mxu0 %v743_v59 }
  0x51   : >> { %774 = vmatpush1.bf16.msra.mxu1 %v773_v5 }
  0x52   : >> { %776 = vmatprep.subr.bf16.mxu1 %v775_v6 }
  0x53   : >> { %746 = vmatpush1.bf16.msra.mxu0 %v745_v4 }
  0x55   : >> { %778 = vmatpush1.bf16.msra.mxu1 %v777_v9 }
  0x56   : >> { %460 = vmatmul.mubr.f32.vlgmr.msra.gmra.mrb[0].mxu0 %v888_v34 }
  0x58   : >> { %531 = vmatmul.mubr.f32.vlgmr.msra.gmra.mrb[0].mxu1 %v888_v34 }
  0xb9   : >> { %v570_v36 = vpop.permute.xlu0 %569 }
  0xba   : >> { %vm571_vm1 = vcmp.eq.s32.totalorder %v570_v36, 1 }
 0x129   : >> { %v461_v12 = vpop.f32.mrb[0].mxu0 }
 0x12a   : >> { %v537_v13 = vadd.f32 %v461_v12, %v327_v10  ;;  %v463_v14 = vpop.f32.mrb[1].mxu0 }
 0x12b   : >> { %v538_v15 = vadd.f32 %v463_v14, %v328_v11  ;;  %v532_v20 = vpop.f32.mrb[0].mxu1 }
 0x12c   : >> { %v707_v16 = vmul.f32 -1.442695, %v537_v13  ;;  %v539_v21 = vadd.f32 %v532_v20, %v329_v17  ;;  %v534_v22 = vpop.f32.mrb[1].mxu1 }
 0x12d   : >> { %v708_v18 = vmul.f32 -1.442695, %v538_v15  ;;  %v540_v23 = vadd.f32 %v534_v22, %v330_v19 }
 0x12e   : >> { %830 = vpow2.f32 %v707_v16 }
 0x12f   : >> { %832 = vpow2.f32 %v708_v18  ;;  %v709_v24 = vmul.f32 -1.442695, %v540_v23 }
 0x131   : >> { %834 = vpow2.f32 %v709_v24 }
 0x132   : >> { %836 = vtanh.f32 %v539_v21 }
 0x138   : >> { %v831_v25 = vpop.eup %830 }
 0x139   : >> { %v833_v26 = vpop.eup %832  ;;  %v544_v27 = vadd.f32 1.0, %v831_v25 }
 0x13a   : >> { %v550_v28 = vadd.f32 1.0, %v833_v26 }
 0x13b   : >> { %838 = vrcp.f32 %v544_v27  ;;  %v835_v29 = vpop.eup %834 }
 0x13c   : >> { %840 = vrcp.f32 %v550_v28  ;;  %v837_v30 = vpop.eup %836  ;;  %v557_v35 = vadd.f32 1.0, %v835_v29 }
 0x13e   : >> { %842 = vrcp.f32 %v557_v35 }
 0x145   : >> { %v839_v31 = vpop.eup %838 }
 0x146   : >> { %v841_v37 = vpop.eup %840  ;;  %v561_v38 = vmul.f32 %v839_v31, %v837_v30 }
 0x147   : >> { %v560_v39 = vmul.f32 %v884_v33, %v841_v37 }
 0x148   : >> { %v843_v42 = vpop.eup %842 }
 0x149   : >> { %v562_v40 = vadd.f32 %v561_v38, %v560_v39 }
 0x14b   : >> { %844 = vtanh.f32 %v562_v40  ;;  %v573_v41 = vsel %vm571_vm1, %v562_v40, %v884_v33  }
 0x14c   : >> { %v1172_v33 = vmov %v573_v41  ;;  %575 = vst [vmem:[%s1050_s23] sm:$0xff] (%p313_p9), %v573_v41 }
 0x153   : > { %315 = sbr.rel (!%p313_p9) target bundleno = 50 (0x32), region = 113 }
 0x155   : >> { %v845_v43 = vpop.eup %844 }
 0x156   : >> { %v564_v44 = vmul.f32 %v845_v43, %v843_v42 }
 0x158   : >> { %v572_v45 = vsel %vm571_vm1, %v564_v44, %v888_v34  }
 0x159   : >> { %v1173_v34 = vmov %v572_v45  ;;  %574 = vst [vmem:[%s1045_s15] sm:$0xff] (%p313_p9), %v572_v45 }
 0x15a PF: > { %p12_p10 = scmp.ge.s32.totalorder %s940_s19, 4   ;;  %s1174_s15 = smov %s876_s16 }
 0x15b   : > { %s1175_s16 = smov %s949_s22  ;;  %s1176_s17 = smov %s940_s19 }
 0x15c   :  { %14 = sbr.rel (!%p12_p10) target bundleno = 2 (0x2), region = 124 }

// kernel: seq2seq_forward.4
= control target key start
LH: loop header
LB: loop body
LE: loop exit
PB: predicated region body
PF: predicated region fallthrough
CT: control target
= control target key end

     0   :  { %v674_v3 = vmov 0.0   ;;  %vm80_vm0 = vcmask 130048   ;;  %v40_v33 = vlaneseq  ;;  %s1132_s1 = inlined_call_operand.vmem [shape: f32[16,1024], index: 1, kind: input, shape index: {}]   ;;  %s1133_s0 = inlined_call_operand.vmem [shape: f32[64,16], index: 0, kind: input, shape index: {}]   ;;  %s1134_s2 = inlined_call_operand.vmem [shape: f32[1,1024], index: 2, kind: input, shape index: {}]   ;;  %s1135_s3 = inlined_call_operand.vmem [shape: f32[64,1024], index: 3, kind: output, shape index: {}]  }
   0x1   :  { %v23_v0 = vld [vmem:[%s1132_s1 + $0x8] sm:$0xff]  ;;  %v25_v2 = vld [vmem:[%s1132_s1 + $0x18] sm:$0xff]  ;;  %169 = vmatprep.mubr.f32.mxu0 %v674_v3  ;;  %282 = vmatprep.mubr.f32.mxu1 %v674_v3  ;;  %v22_v6 = vld [vmem:[%s1132_s1] sm:$0xff] }
   0x2   :  { %v31_v1 = vld [vmem:[%s1132_s1 + $0x48] sm:$0xff]  ;;  %v33_v5 = vld [vmem:[%s1132_s1 + $0x58] sm:$0xff]  ;;  %v30_v7 = vld [vmem:[%s1132_s1 + $0x40] sm:$0xff]  ;;  %v837_v34 = vshrl.u32 %v40_v33, 7 }
   0x3   :  { %v657_v4 = vpack.c.bf16 %v31_v1, %v23_v0  ;;  %v661_v8 = vpack.c.bf16 %v33_v5, %v25_v2  ;;  %v659_v9 = vpack.c.bf16 %v30_v7, %v22_v6  ;;  %v24_v10 = vld [vmem:[%s1132_s1 + $0x10] sm:$0xff]  ;;  %v724_v12 = vld [vmem:[%s1133_s0] sm:$0xff]  ;;  %v27_v14 = vld [vmem:[%s1132_s1 + $0x28] sm:$0xff] }
   0x4   :  { %v32_v11 = vld [vmem:[%s1132_s1 + $0x50] sm:$0xff]  ;;  %v35_v15 = vld [vmem:[%s1132_s1 + $0x68] sm:$0xff]  ;;  %v29_v16 = vld [vmem:[%s1132_s1 + $0x38] sm:$0xff]  ;;  %v42_v35 = vsub.s32 0, %v837_v34  ;;  %v50_v37 = vsub.s32 2, %v837_v34  ;;  %v46_v38 = vsub.s32 1, %v837_v34 }
   0x5   :  { %658 = vmatprep.subr.bf16.mxu0 %v657_v4  ;;  %v663_v13 = vpack.c.bf16 %v32_v11, %v24_v10  ;;  %662 = vmatprep.subr.bf16.mxu1 %v661_v8  ;;  %v665_v17 = vpack.c.bf16 %v35_v15, %v27_v14  ;;  %v37_v18 = vld [vmem:[%s1132_s1 + $0x78] sm:$0xff]  ;;  %v26_v19 = vld [vmem:[%s1132_s1 + $0x20] sm:$0xff]  ;;  %v28_v23 = vld [vmem:[%s1132_s1 + $0x30] sm:$0xff]  ;;  %v54_v39 = vsub.s32 3, %v837_v34 }
   0x6   :  { %660 = vmatpush1.bf16.msra.mxu0 %v659_v9  ;;  %v34_v20 = vld [vmem:[%s1132_s1 + $0x60] sm:$0xff]  ;;  %v669_v21 = vpack.c.bf16 %v37_v18, %v29_v16  ;;  %v36_v24 = vld [vmem:[%s1132_s1 + $0x70] sm:$0xff]  ;;  %v15_v26 = vld [vmem:[%s1133_s0 + $0x8] sm:$0xff] }
   0x7   :  { %664 = vmatpush1.bf16.msra.mxu1 %v663_v13  ;;  %v667_v22 = vpack.c.bf16 %v34_v20, %v26_v19  ;;  %666 = vmatprep.subr.bf16.mxu0 %v665_v17  ;;  %v671_v25 = vpack.c.bf16 %v36_v24, %v28_v23  ;;  %v16_v27 = vld [vmem:[%s1133_s0 + $0x10] sm:$0xff]  ;;  %v17_v28 = vld [vmem:[%s1133_s0 + $0x18] sm:$0xff]  ;;  %v18_v29 = vld [vmem:[%s1133_s0 + $0x20] sm:$0xff] }
   0x8   :  { %670 = vmatprep.subr.bf16.mxu1 %v669_v21  ;;  %v19_v30 = vld [vmem:[%s1133_s0 + $0x28] sm:$0xff]  ;;  %v20_v31 = vld [vmem:[%s1133_s0 + $0x30] sm:$0xff]  ;;  %v21_v32 = vld [vmem:[%s1133_s0 + $0x38] sm:$0xff] }
   0x9   :  { %625 = vmatmul.mubr.msk.f32.vlgmr.msra.gmra.mrb[0].mxu0 %vm80_vm0, %v724_v12  ;;  %v843_v36 = vld [vmem:[%s1134_s2] sm:$0xff] }
   0xa   :  { %633 = vmatmul.mubr.msk.f32.vlgmr.msra.gmra.mrb[0].mxu1 %vm80_vm0, %v724_v12  ;;  %668 = vmatpush1.bf16.msra.mxu0 %v667_v22  ;;  %v849_v40 = vrot.slane %v843_v36, %v42_v35  ;;  %v852_v41 = vrot.slane %v843_v36, %v50_v37  ;;  %v855_v42 = vrot.slane %v843_v36, %v46_v38  ;;  %v66_v38 = vsub.s32 6, %v837_v34 }
   0xb   :  { %672 = vmatpush1.bf16.msra.mxu1 %v671_v25  ;;  %175 = vmatprep.mubr.f32.mxu0 %v674_v3  ;;  %v858_v43 = vrot.slane %v843_v36, %v54_v39  ;;  %v62_v39 = vsub.s32 5, %v837_v34 }
   0xc   :  { %288 = vmatprep.mubr.f32.mxu1 %v674_v3 }
   0xd   :  { %626 = vmatmul.mubr.msk.f32.gmra.mrb[2].mxu0 %vm80_vm0, %v15_v26 }
   0xe   :  { %634 = vmatmul.mubr.msk.f32.gmra.mrb[2].mxu1 %vm80_vm0, %v15_v26  ;;  %181 = vmatprep.mubr.f32.mxu0 %v674_v3 }
   0xf   :  { %294 = vmatprep.mubr.f32.mxu1 %v674_v3 }
  0x11   :  { %627 = vmatmul.mubr.msk.f32.gmra.mrb[4].mxu0 %vm80_vm0, %v16_v27 }
  0x12   :  { %635 = vmatmul.mubr.msk.f32.gmra.mrb[4].mxu1 %vm80_vm0, %v16_v27  ;;  %187 = vmatprep.mubr.f32.mxu0 %v674_v3 }
  0x13   :  { %300 = vmatprep.mubr.f32.mxu1 %v674_v3 }
  0x15   :  { %628 = vmatmul.mubr.msk.f32.gmra.mrb[6].mxu0 %vm80_vm0, %v17_v28 }
  0x16   :  { %636 = vmatmul.mubr.msk.f32.gmra.mrb[6].mxu1 %vm80_vm0, %v17_v28  ;;  %193 = vmatprep.mubr.f32.mxu0 %v674_v3 }
  0x17   :  { %306 = vmatprep.mubr.f32.mxu1 %v674_v3 }
  0x19   :  { %629 = vmatmul.mubr.msk.f32.gmra.mrb[8].mxu0 %vm80_vm0, %v18_v29 }
  0x1a   :  { %637 = vmatmul.mubr.msk.f32.gmra.mrb[8].mxu1 %vm80_vm0, %v18_v29  ;;  %199 = vmatprep.mubr.f32.mxu0 %v674_v3 }
  0x1b   :  { %312 = vmatprep.mubr.f32.mxu1 %v674_v3 }
  0x1d   :  { %630 = vmatmul.mubr.msk.f32.gmra.mrb[10].mxu0 %vm80_vm0, %v19_v30 }
  0x1e   :  { %638 = vmatmul.mubr.msk.f32.gmra.mrb[10].mxu1 %vm80_vm0, %v19_v30  ;;  %205 = vmatprep.mubr.f32.mxu0 %v674_v3 }
  0x1f   :  { %318 = vmatprep.mubr.f32.mxu1 %v674_v3 }
  0x21   :  { %631 = vmatmul.mubr.msk.f32.gmra.mrb[12].mxu0 %vm80_vm0, %v20_v31 }
  0x22   :  { %639 = vmatmul.mubr.msk.f32.gmra.mrb[12].mxu1 %vm80_vm0, %v20_v31  ;;  %211 = vmatprep.mubr.f32.mxu0 %v674_v3 }
  0x23   :  { %324 = vmatprep.mubr.f32.mxu1 %v674_v3 }
  0x25   :  { %632 = vmatmul.mubr.msk.f32.gmra.mrb[14].mxu0 %vm80_vm0, %v21_v32 }
  0x26   :  { %640 = vmatmul.mubr.msk.f32.gmra.mrb[14].mxu1 %vm80_vm0, %v21_v32  ;;  %395 = vmatprep.mubr.f32.mxu0 %v674_v3 }
  0x27   :  { %508 = vmatprep.mubr.f32.mxu1 %v674_v3 }
  0x29   :  { %641 = vmatmul.mubr.msk.f32.vlgmr.msra.gmra.mrb[16].mxu0 %vm80_vm0, %v724_v12 }
  0x2a   :  { %649 = vmatmul.mubr.msk.f32.vlgmr.msra.gmra.mrb[16].mxu1 %vm80_vm0, %v724_v12  ;;  %401 = vmatprep.mubr.f32.mxu0 %v674_v3 }
  0x2b   :  { %514 = vmatprep.mubr.f32.mxu1 %v674_v3 }
  0x2d   :  { %642 = vmatmul.mubr.msk.f32.gmra.mrb[18].mxu0 %vm80_vm0, %v15_v26 }
  0x2e   :  { %650 = vmatmul.mubr.msk.f32.gmra.mrb[18].mxu1 %vm80_vm0, %v15_v26  ;;  %407 = vmatprep.mubr.f32.mxu0 %v674_v3 }
  0x2f   :  { %520 = vmatprep.mubr.f32.mxu1 %v674_v3 }
  0x31   :  { %643 = vmatmul.mubr.msk.f32.gmra.mrb[20].mxu0 %vm80_vm0, %v16_v27 }
  0x32   :  { %651 = vmatmul.mubr.msk.f32.gmra.mrb[20].mxu1 %vm80_vm0, %v16_v27  ;;  %413 = vmatprep.mubr.f32.mxu0 %v674_v3 }
  0x33   :  { %526 = vmatprep.mubr.f32.mxu1 %v674_v3 }
  0x35   :  { %644 = vmatmul.mubr.msk.f32.gmra.mrb[22].mxu0 %vm80_vm0, %v17_v28 }
  0x36   :  { %652 = vmatmul.mubr.msk.f32.gmra.mrb[22].mxu1 %vm80_vm0, %v17_v28  ;;  %419 = vmatprep.mubr.f32.mxu0 %v674_v3 }
  0x37   :  { %532 = vmatprep.mubr.f32.mxu1 %v674_v3 }
  0x39   :  { %645 = vmatmul.mubr.msk.f32.gmra.mrb[24].mxu0 %vm80_vm0, %v18_v29 }
  0x3a   :  { %653 = vmatmul.mubr.msk.f32.gmra.mrb[24].mxu1 %vm80_vm0, %v18_v29  ;;  %425 = vmatprep.mubr.f32.mxu0 %v674_v3 }
  0x3b   :  { %538 = vmatprep.mubr.f32.mxu1 %v674_v3 }
  0x3d   :  { %646 = vmatmul.mubr.msk.f32.gmra.mrb[26].mxu0 %vm80_vm0, %v19_v30 }
  0x3e   :  { %654 = vmatmul.mubr.msk.f32.gmra.mrb[26].mxu1 %vm80_vm0, %v19_v30  ;;  %431 = vmatprep.mubr.f32.mxu0 %v674_v3 }
  0x3f   :  { %544 = vmatprep.mubr.f32.mxu1 %v674_v3 }
  0x41   :  { %647 = vmatmul.mubr.msk.f32.gmra.mrb[28].mxu0 %vm80_vm0, %v20_v31 }
  0x42   :  { %655 = vmatmul.mubr.msk.f32.gmra.mrb[28].mxu1 %vm80_vm0, %v20_v31  ;;  %437 = vmatprep.mubr.f32.mxu0 %v674_v3 }
  0x43   :  { %550 = vmatprep.mubr.f32.mxu1 %v674_v3 }
  0x45   :  { %648 = vmatmul.mubr.msk.f32.gmra.mrb[30].mxu0 %vm80_vm0, %v21_v32 }
  0x46   :  { %656 = vmatmul.mubr.msk.f32.gmra.mrb[30].mxu1 %vm80_vm0, %v21_v32  ;;  %v58_v32 = vsub.s32 4, %v837_v34 }
  0xdc   :  { %v171_v44 = vpop.f32.mrb[0].mxu0 }
  0xdd   :  { %v172_v45 = vadd.f32 %v171_v44, %v849_v40  ;;  %v284_v46 = vpop.f32.mrb[0].mxu1  ;;  %v173_v47 = vpop.f32.mrb[1].mxu0 }
  0xde   :  { %v285_v48 = vadd.f32 %v284_v46, %v852_v41  ;;  %v174_v49 = vadd.f32 %v173_v47, %v855_v42  ;;  %v286_v50 = vpop.f32.mrb[1].mxu1 }
  0xdf   :  { %557 = vst [vmem:[%s1135_s3] sm:$0xff] %v172_v45  ;;  %v287_v51 = vadd.f32 %v286_v50, %v858_v43  ;;  %v70_v45 = vsub.s32 7, %v837_v34  ;;  %v978_v50 = vrot.slane %v843_v36, %v58_v32 }
  0xe0   :  { %559 = vst [vmem:[%s1135_s3 + $0x10] sm:$0xff] %v285_v48  ;;  %558 = vst [vmem:[%s1135_s3 + $0x8] sm:$0xff] %v174_v49  ;;  %v177_v52 = vpop.f32.mrb[2].mxu0 }
  0xe1   :  { %560 = vst [vmem:[%s1135_s3 + $0x18] sm:$0xff] %v287_v51  ;;  %v178_v53 = vadd.f32 %v177_v52, %v849_v40  ;;  %v290_v54 = vpop.f32.mrb[2].mxu1  ;;  %v179_v55 = vpop.f32.mrb[3].mxu0 }
  0xe2   :  { %v291_v56 = vadd.f32 %v290_v54, %v852_v41  ;;  %v180_v57 = vadd.f32 %v179_v55, %v855_v42  ;;  %v292_v58 = vpop.f32.mrb[3].mxu1  ;;  %v986_v54 = vrot.slane %v843_v36, %v62_v39  ;;  %v993_v55 = vrot.slane %v843_v36, %v70_v45 }
  0xe3   :  { %565 = vst [vmem:[%s1135_s3 + $0x40] sm:$0xff] %v178_v53  ;;  %v293_v59 = vadd.f32 %v292_v58, %v858_v43  ;;  %v983_v53 = vrot.slane %v843_v36, %v66_v38 }
  0xe4   :  { %567 = vst [vmem:[%s1135_s3 + $0x50] sm:$0xff] %v291_v56  ;;  %566 = vst [vmem:[%s1135_s3 + $0x48] sm:$0xff] %v180_v57  ;;  %v183_v60 = vpop.f32.mrb[4].mxu0 }
  0xe5   :  { %568 = vst [vmem:[%s1135_s3 + $0x58] sm:$0xff] %v293_v59  ;;  %v184_v61 = vadd.f32 %v183_v60, %v849_v40  ;;  %v296_v62 = vpop.f32.mrb[4].mxu1  ;;  %v185_v63 = vpop.f32.mrb[5].mxu0 }
  0xe6   :  { %v297_v0 = vadd.f32 %v296_v62, %v852_v41  ;;  %v186_v1 = vadd.f32 %v185_v63, %v855_v42  ;;  %v298_v2 = vpop.f32.mrb[5].mxu1 }
  0xe7   :  { %573 = vst [vmem:[%s1135_s3 + $0x80] sm:$0xff] %v184_v61  ;;  %v299_v3 = vadd.f32 %v298_v2, %v858_v43 }
  0xe8   :  { %575 = vst [vmem:[%s1135_s3 + $0x90] sm:$0xff] %v297_v0  ;;  %574 = vst [vmem:[%s1135_s3 + $0x88] sm:$0xff] %v186_v1  ;;  %v189_v4 = vpop.f32.mrb[6].mxu0 }
  0xe9   :  { %576 = vst [vmem:[%s1135_s3 + $0x98] sm:$0xff] %v299_v3  ;;  %v190_v5 = vadd.f32 %v189_v4, %v849_v40  ;;  %v302_v6 = vpop.f32.mrb[6].mxu1  ;;  %v191_v7 = vpop.f32.mrb[7].mxu0 }
  0xea   :  { %v303_v8 = vadd.f32 %v302_v6, %v852_v41  ;;  %v192_v9 = vadd.f32 %v191_v7, %v855_v42  ;;  %v304_v10 = vpop.f32.mrb[7].mxu1 }
  0xeb   :  { %581 = vst [vmem:[%s1135_s3 + $0xc0] sm:$0xff] %v190_v5  ;;  %v305_v11 = vadd.f32 %v304_v10, %v858_v43 }
  0xec   :  { %583 = vst [vmem:[%s1135_s3 + $0xd0] sm:$0xff] %v303_v8  ;;  %582 = vst [vmem:[%s1135_s3 + $0xc8] sm:$0xff] %v192_v9  ;;  %v195_v12 = vpop.f32.mrb[8].mxu0 }
  0xed   :  { %584 = vst [vmem:[%s1135_s3 + $0xd8] sm:$0xff] %v305_v11  ;;  %v196_v13 = vadd.f32 %v195_v12, %v849_v40  ;;  %v308_v14 = vpop.f32.mrb[8].mxu1  ;;  %v197_v15 = vpop.f32.mrb[9].mxu0 }
  0xee   :  { %v309_v16 = vadd.f32 %v308_v14, %v852_v41  ;;  %v198_v17 = vadd.f32 %v197_v15, %v855_v42  ;;  %v310_v18 = vpop.f32.mrb[9].mxu1 }
  0xef   :  { %589 = vst [vmem:[%s1135_s3 + $0x100] sm:$0xff] %v196_v13  ;;  %v311_v19 = vadd.f32 %v310_v18, %v858_v43 }
  0xf0   :  { %591 = vst [vmem:[%s1135_s3 + $0x110] sm:$0xff] %v309_v16  ;;  %590 = vst [vmem:[%s1135_s3 + $0x108] sm:$0xff] %v198_v17  ;;  %v201_v20 = vpop.f32.mrb[10].mxu0 }
  0xf1   :  { %592 = vst [vmem:[%s1135_s3 + $0x118] sm:$0xff] %v311_v19  ;;  %v202_v21 = vadd.f32 %v201_v20, %v849_v40  ;;  %v314_v22 = vpop.f32.mrb[10].mxu1  ;;  %v203_v23 = vpop.f32.mrb[11].mxu0 }
  0xf2   :  { %v315_v24 = vadd.f32 %v314_v22, %v852_v41  ;;  %v204_v25 = vadd.f32 %v203_v23, %v855_v42  ;;  %v316_v26 = vpop.f32.mrb[11].mxu1 }
  0xf3   :  { %597 = vst [vmem:[%s1135_s3 + $0x140] sm:$0xff] %v202_v21  ;;  %v317_v27 = vadd.f32 %v316_v26, %v858_v43 }
  0xf4   :  { %599 = vst [vmem:[%s1135_s3 + $0x150] sm:$0xff] %v315_v24  ;;  %598 = vst [vmem:[%s1135_s3 + $0x148] sm:$0xff] %v204_v25  ;;  %v207_v28 = vpop.f32.mrb[12].mxu0 }
  0xf5   :  { %600 = vst [vmem:[%s1135_s3 + $0x158] sm:$0xff] %v317_v27  ;;  %v208_v29 = vadd.f32 %v207_v28, %v849_v40  ;;  %v320_v30 = vpop.f32.mrb[12].mxu1  ;;  %v209_v31 = vpop.f32.mrb[13].mxu0 }
  0xf6   :  { %v321_v33 = vadd.f32 %v320_v30, %v852_v41  ;;  %v210_v35 = vadd.f32 %v209_v31, %v855_v42  ;;  %v322_v37 = vpop.f32.mrb[13].mxu1 }
  0xf7   :  { %605 = vst [vmem:[%s1135_s3 + $0x180] sm:$0xff] %v208_v29  ;;  %v323_v44 = vadd.f32 %v322_v37, %v858_v43 }
  0xf8   :  { %607 = vst [vmem:[%s1135_s3 + $0x190] sm:$0xff] %v321_v33  ;;  %606 = vst [vmem:[%s1135_s3 + $0x188] sm:$0xff] %v210_v35  ;;  %v213_v46 = vpop.f32.mrb[14].mxu0 }
  0xf9   :  { %608 = vst [vmem:[%s1135_s3 + $0x198] sm:$0xff] %v323_v44  ;;  %v214_v47 = vadd.f32 %v213_v46, %v849_v40  ;;  %v326_v48 = vpop.f32.mrb[14].mxu1  ;;  %v215_v49 = vpop.f32.mrb[15].mxu0 }
  0xfa   :  { %v327_v34 = vadd.f32 %v326_v48, %v852_v41  ;;  %v216_v51 = vadd.f32 %v215_v49, %v855_v42  ;;  %v328_v52 = vpop.f32.mrb[15].mxu1 }
  0xfb   :  { %613 = vst [vmem:[%s1135_s3 + $0x1c0] sm:$0xff] %v214_v47  ;;  %v329_v40 = vadd.f32 %v328_v52, %v858_v43 }
  0xfc   :  { %615 = vst [vmem:[%s1135_s3 + $0x1d0] sm:$0xff] %v327_v34  ;;  %614 = vst [vmem:[%s1135_s3 + $0x1c8] sm:$0xff] %v216_v51  ;;  %v397_v41 = vpop.f32.mrb[16].mxu0 }
  0xfd   :  { %616 = vst [vmem:[%s1135_s3 + $0x1d8] sm:$0xff] %v329_v40  ;;  %v398_v42 = vadd.f32 %v397_v41, %v978_v50  ;;  %v510_v56 = vpop.f32.mrb[16].mxu1  ;;  %v399_v43 = vpop.f32.mrb[17].mxu0 }
  0xfe   :  { %v511_v36 = vadd.f32 %v510_v56, %v983_v53  ;;  %v400_v57 = vadd.f32 %v399_v43, %v986_v54  ;;  %v512_v58 = vpop.f32.mrb[17].mxu1 }
  0xff   :  { %561 = vst [vmem:[%s1135_s3 + $0x20] sm:$0xff] %v398_v42  ;;  %v513_v59 = vadd.f32 %v512_v58, %v993_v55 }
 0x100   :  { %563 = vst [vmem:[%s1135_s3 + $0x30] sm:$0xff] %v511_v36  ;;  %562 = vst [vmem:[%s1135_s3 + $0x28] sm:$0xff] %v400_v57  ;;  %v403_v60 = vpop.f32.mrb[18].mxu0 }
 0x101   :  { %564 = vst [vmem:[%s1135_s3 + $0x38] sm:$0xff] %v513_v59  ;;  %v404_v61 = vadd.f32 %v403_v60, %v978_v50  ;;  %v516_v62 = vpop.f32.mrb[18].mxu1  ;;  %v405_v63 = vpop.f32.mrb[19].mxu0 }
 0x102   :  { %v517_v0 = vadd.f32 %v516_v62, %v983_v53  ;;  %v406_v1 = vadd.f32 %v405_v63, %v986_v54  ;;  %v518_v2 = vpop.f32.mrb[19].mxu1 }
 0x103   :  { %569 = vst [vmem:[%s1135_s3 + $0x60] sm:$0xff] %v404_v61  ;;  %v519_v3 = vadd.f32 %v518_v2, %v993_v55 }
 0x104   :  { %571 = vst [vmem:[%s1135_s3 + $0x70] sm:$0xff] %v517_v0  ;;  %570 = vst [vmem:[%s1135_s3 + $0x68] sm:$0xff] %v406_v1  ;;  %v409_v4 = vpop.f32.mrb[20].mxu0 }
 0x105   :  { %572 = vst [vmem:[%s1135_s3 + $0x78] sm:$0xff] %v519_v3  ;;  %v410_v5 = vadd.f32 %v409_v4, %v978_v50  ;;  %v522_v6 = vpop.f32.mrb[20].mxu1  ;;  %v411_v7 = vpop.f32.mrb[21].mxu0 }
 0x106   :  { %v523_v8 = vadd.f32 %v522_v6, %v983_v53  ;;  %v412_v9 = vadd.f32 %v411_v7, %v986_v54  ;;  %v524_v10 = vpop.f32.mrb[21].mxu1 }
 0x107   :  { %577 = vst [vmem:[%s1135_s3 + $0xa0] sm:$0xff] %v410_v5  ;;  %v525_v11 = vadd.f32 %v524_v10, %v993_v55 }
 0x108   :  { %579 = vst [vmem:[%s1135_s3 + $0xb0] sm:$0xff] %v523_v8  ;;  %578 = vst [vmem:[%s1135_s3 + $0xa8] sm:$0xff] %v412_v9  ;;  %v415_v12 = vpop.f32.mrb[22].mxu0 }
 0x109   :  { %580 = vst [vmem:[%s1135_s3 + $0xb8] sm:$0xff] %v525_v11  ;;  %v416_v13 = vadd.f32 %v415_v12, %v978_v50  ;;  %v528_v14 = vpop.f32.mrb[22].mxu1  ;;  %v417_v15 = vpop.f32.mrb[23].mxu0 }
 0x10a   :  { %v529_v16 = vadd.f32 %v528_v14, %v983_v53  ;;  %v418_v17 = vadd.f32 %v417_v15, %v986_v54  ;;  %v530_v18 = vpop.f32.mrb[23].mxu1 }
 0x10b   :  { %585 = vst [vmem:[%s1135_s3 + $0xe0] sm:$0xff] %v416_v13  ;;  %v531_v19 = vadd.f32 %v530_v18, %v993_v55 }
 0x10c   :  { %587 = vst [vmem:[%s1135_s3 + $0xf0] sm:$0xff] %v529_v16  ;;  %586 = vst [vmem:[%s1135_s3 + $0xe8] sm:$0xff] %v418_v17  ;;  %v421_v20 = vpop.f32.mrb[24].mxu0 }
 0x10d   :  { %588 = vst [vmem:[%s1135_s3 + $0xf8] sm:$0xff] %v531_v19  ;;  %v422_v21 = vadd.f32 %v421_v20, %v978_v50  ;;  %v534_v22 = vpop.f32.mrb[24].mxu1  ;;  %v423_v23 = vpop.f32.mrb[25].mxu0 }
 0x10e   :  { %v535_v24 = vadd.f32 %v534_v22, %v983_v53  ;;  %v424_v25 = vadd.f32 %v423_v23, %v986_v54  ;;  %v536_v26 = vpop.f32.mrb[25].mxu1 }
 0x10f   :  { %593 = vst [vmem:[%s1135_s3 + $0x120] sm:$0xff] %v422_v21  ;;  %v537_v27 = vadd.f32 %v536_v26, %v993_v55 }
 0x110   :  { %595 = vst [vmem:[%s1135_s3 + $0x130] sm:$0xff] %v535_v24  ;;  %594 = vst [vmem:[%s1135_s3 + $0x128] sm:$0xff] %v424_v25  ;;  %v427_v28 = vpop.f32.mrb[26].mxu0 }
 0x111   :  { %596 = vst [vmem:[%s1135_s3 + $0x138] sm:$0xff] %v537_v27  ;;  %v428_v29 = vadd.f32 %v427_v28, %v978_v50  ;;  %v540_v30 = vpop.f32.mrb[26].mxu1  ;;  %v429_v31 = vpop.f32.mrb[27].mxu0 }
 0x112   :  { %v541_v32 = vadd.f32 %v540_v30, %v983_v53  ;;  %v430_v33 = vadd.f32 %v429_v31, %v986_v54  ;;  %v542_v35 = vpop.f32.mrb[27].mxu1 }
 0x113   :  { %601 = vst [vmem:[%s1135_s3 + $0x160] sm:$0xff] %v428_v29  ;;  %v543_v37 = vadd.f32 %v542_v35, %v993_v55 }
 0x114   :  { %603 = vst [vmem:[%s1135_s3 + $0x170] sm:$0xff] %v541_v32  ;;  %602 = vst [vmem:[%s1135_s3 + $0x168] sm:$0xff] %v430_v33  ;;  %v433_v38 = vpop.f32.mrb[28].mxu0 }
 0x115   :  { %604 = vst [vmem:[%s1135_s3 + $0x178] sm:$0xff] %v543_v37  ;;  %v434_v39 = vadd.f32 %v433_v38, %v978_v50  ;;  %v546_v44 = vpop.f32.mrb[28].mxu1  ;;  %v435_v45 = vpop.f32.mrb[29].mxu0 }
 0x116   :  { %v547_v46 = vadd.f32 %v546_v44, %v983_v53  ;;  %v436_v47 = vadd.f32 %v435_v45, %v986_v54  ;;  %v548_v48 = vpop.f32.mrb[29].mxu1 }
 0x117   :  { %609 = vst [vmem:[%s1135_s3 + $0x1a0] sm:$0xff] %v434_v39  ;;  %v549_v49 = vadd.f32 %v548_v48, %v993_v55 }
 0x118   :  { %611 = vst [vmem:[%s1135_s3 + $0x1b0] sm:$0xff] %v547_v46  ;;  %610 = vst [vmem:[%s1135_s3 + $0x1a8] sm:$0xff] %v436_v47  ;;  %v439_v34 = vpop.f32.mrb[30].mxu0 }
 0x119   :  { %612 = vst [vmem:[%s1135_s3 + $0x1b8] sm:$0xff] %v549_v49  ;;  %v440_v51 = vadd.f32 %v439_v34, %v978_v50  ;;  %v552_v52 = vpop.f32.mrb[30].mxu1  ;;  %v441_v40 = vpop.f32.mrb[31].mxu0 }
 0x11a   :  { %v553_v41 = vadd.f32 %v552_v52, %v983_v53  ;;  %v442_v42 = vadd.f32 %v441_v40, %v986_v54  ;;  %v554_v56 = vpop.f32.mrb[31].mxu1 }
 0x11b   :  { %617 = vst [vmem:[%s1135_s3 + $0x1e0] sm:$0xff] %v440_v51  ;;  %v555_v43 = vadd.f32 %v554_v56, %v993_v55 }
 0x11c   :  { %619 = vst [vmem:[%s1135_s3 + $0x1f0] sm:$0xff] %v553_v41  ;;  %618 = vst [vmem:[%s1135_s3 + $0x1e8] sm:$0xff] %v442_v42 }
 0x11d   :  { %620 = vst [vmem:[%s1135_s3 + $0x1f8] sm:$0xff] %v555_v43 }

// kernel: seq2seq_forward.6
= control target key start
LH: loop header
LB: loop body
LE: loop exit
PB: predicated region body
PF: predicated region fallthrough
CT: control target
= control target key end

     0   :  { %v319_v3 = vmov 0.0   ;;  %vm69_vm0 = vcmask 1043456   ;;  %vm53_vm1 = vcmask 162816   ;;  %v33_v22 = vlaneseq  ;;  %s464_s1 = inlined_call_operand.vmem [shape: f32[20,512], index: 1, kind: input, shape index: {}]   ;;  %s465_s0 = inlined_call_operand.vmem [shape: f32[40,20], index: 0, kind: input, shape index: {}]   ;;  %s466_s2 = inlined_call_operand.vmem [shape: f32[1,512], index: 2, kind: input, shape index: {}]   ;;  %s467_s3 = inlined_call_operand.vmem [shape: f32[40,512], index: 3, kind: output, shape index: {}]  }
   0x1   :  { %v20_v0 = vld [vmem:[%s464_s1 + $0x8] sm:$0xff]  ;;  %v22_v2 = vld [vmem:[%s464_s1 + $0x18] sm:$0xff]  ;;  %146 = vmatprep.mubr.f32.mxu0 %v319_v3  ;;  %241 = vmatprep.mubr.f32.mxu1 %v319_v3  ;;  %v19_v6 = vld [vmem:[%s464_s1] sm:$0xff] }
   0x2   :  { %v24_v1 = vld [vmem:[%s464_s1 + $0x28] sm:$0xff]  ;;  %v26_v5 = vld [vmem:[%s464_s1 + $0x38] sm:$0xff]  ;;  %v23_v7 = vld [vmem:[%s464_s1 + $0x20] sm:$0xff]  ;;  %v34_v23 = vshrl.u32 %v33_v22, 7 }
   0x3   :  { %v310_v4 = vpack.c.bf16 %v24_v1, %v20_v0  ;;  %v314_v8 = vpack.c.bf16 %v26_v5, %v22_v2  ;;  %v312_v9 = vpack.c.bf16 %v23_v7, %v19_v6  ;;  %v21_v10 = vld [vmem:[%s464_s1 + $0x10] sm:$0xff]  ;;  %v28_v12 = vld [vmem:[%s464_s1 + $0x48] sm:$0xf]  ;;  %v30_v14 = vld [vmem:[%s464_s1 + $0x58] sm:$0xf] }
   0x4   :  { %v25_v11 = vld [vmem:[%s464_s1 + $0x30] sm:$0xff]  ;;  %v27_v15 = vld [vmem:[%s464_s1 + $0x40] sm:$0xf]  ;;  %v15_v18 = vld [vmem:[%s465_s0 + $0x8] sm:$0xff]  ;;  %v35_v24 = vsub.s32 0, %v34_v23  ;;  %v43_v26 = vsub.s32 2, %v34_v23 }
   0x5   :  { %311 = vmatprep.subr.bf16.mxu0 %v310_v4  ;;  %v316_v13 = vpack.c.bf16 %v25_v11, %v21_v10  ;;  %315 = vmatprep.subr.bf16.mxu1 %v314_v8  ;;  %v29_v16 = vld [vmem:[%s464_s1 + $0x50] sm:$0xf]  ;;  %v14_v17 = vld [vmem:[%s465_s0] sm:$0xff]  ;;  %v17_v20 = vld [vmem:[%s465_s0 + $0x18] sm:$0xff]  ;;  %v39_v27 = vsub.s32 1, %v34_v23  ;;  %v47_v28 = vsub.s32 3, %v34_v23 }
   0x6   :  { %313 = vmatpush1.bf16.msra.mxu0 %v312_v9  ;;  %v16_v19 = vld [vmem:[%s465_s0 + $0x10] sm:$0xff]  ;;  %v18_v21 = vld [vmem:[%s465_s0 + $0x20] sm:$0xff] }
   0x7   :  { %317 = vmatpush1.bf16.msra.mxu1 %v316_v13  ;;  %296 = vmatprep.subr.msk.mxu0 %vm69_vm0, %v28_v12  ;;  %v31_v25 = vld [vmem:[%s466_s2] sm:$0xf] }
   0x8   :  { %303 = vmatprep.subr.msk.mxu1 %vm69_vm0, %v30_v14  ;;  %v36_v29 = vrot.slane %v31_v25, %v35_v24  ;;  %v44_v30 = vrot.slane %v31_v25, %v43_v26  ;;  %v40_v31 = vrot.slane %v31_v25, %v39_v27  ;;  %v48_v32 = vrot.slane %v31_v25, %v47_v28 }
   0xa   :  { %297 = vmatpush1.msk.msra.mxu0 %vm69_vm0, %v27_v15 }
   0xb   :  { %304 = vmatpush1.msk.msra.mxu1 %vm69_vm0, %v29_v16  ;;  %298 = vmatmul.mubr.msk.f32.vlgmr.msra.gmra.mrb[0].mxu0 %vm53_vm1, %v14_v17 }
   0xc   :  { %305 = vmatmul.mubr.msk.f32.vlgmr.msra.gmra.mrb[0].mxu1 %vm53_vm1, %v14_v17  ;;  %152 = vmatprep.mubr.f32.mxu0 %v319_v3 }
   0xd   :  { %247 = vmatprep.mubr.f32.mxu1 %v319_v3 }
   0xf   :  { %299 = vmatmul.mubr.msk.f32.gmra.mrb[2].mxu0 %vm53_vm1, %v15_v18 }
  0x10   :  { %306 = vmatmul.mubr.msk.f32.gmra.mrb[2].mxu1 %vm53_vm1, %v15_v18  ;;  %158 = vmatprep.mubr.f32.mxu0 %v319_v3 }
  0x11   :  { %253 = vmatprep.mubr.f32.mxu1 %v319_v3 }
  0x13   :  { %300 = vmatmul.mubr.msk.f32.gmra.mrb[4].mxu0 %vm53_vm1, %v16_v19 }
  0x14   :  { %307 = vmatmul.mubr.msk.f32.gmra.mrb[4].mxu1 %vm53_vm1, %v16_v19  ;;  %164 = vmatprep.mubr.f32.mxu0 %v319_v3 }
  0x15   :  { %259 = vmatprep.mubr.f32.mxu1 %v319_v3 }
  0x17   :  { %301 = vmatmul.mubr.msk.f32.gmra.mrb[6].mxu0 %vm53_vm1, %v17_v20 }
  0x18   :  { %308 = vmatmul.mubr.msk.f32.gmra.mrb[6].mxu1 %vm53_vm1, %v17_v20  ;;  %170 = vmatprep.mubr.f32.mxu0 %v319_v3 }
  0x19   :  { %265 = vmatprep.mubr.f32.mxu1 %v319_v3 }
  0x1b   :  { %302 = vmatmul.mubr.msk.f32.gmra.mrb[8].mxu0 %vm53_vm1, %v18_v21 }
  0x1c   :  { %309 = vmatmul.mubr.msk.f32.gmra.mrb[8].mxu1 %vm53_vm1, %v18_v21 }
  0xde   :  { %v148_v33 = vpop.f32.mrb[0].mxu0 }
  0xdf   :  { %v149_v34 = vadd.f32 %v148_v33, %v36_v29  ;;  %v243_v35 = vpop.f32.mrb[0].mxu1  ;;  %v150_v36 = vpop.f32.mrb[1].mxu0 }
  0xe0   :  { %v244_v37 = vadd.f32 %v243_v35, %v44_v30  ;;  %v151_v38 = vadd.f32 %v150_v36, %v40_v31  ;;  %v245_v39 = vpop.f32.mrb[1].mxu1 }
  0xe1   :  { %272 = vst [vmem:[%s467_s3] sm:$0xff] %v149_v34  ;;  %v246_v40 = vadd.f32 %v245_v39, %v48_v32 }
  0xe2   :  { %274 = vst [vmem:[%s467_s3 + $0x10] sm:$0xff] %v244_v37  ;;  %273 = vst [vmem:[%s467_s3 + $0x8] sm:$0xff] %v151_v38  ;;  %v154_v41 = vpop.f32.mrb[2].mxu0 }
  0xe3   :  { %275 = vst [vmem:[%s467_s3 + $0x18] sm:$0xff] %v246_v40  ;;  %v155_v42 = vadd.f32 %v154_v41, %v36_v29  ;;  %v249_v43 = vpop.f32.mrb[2].mxu1  ;;  %v156_v44 = vpop.f32.mrb[3].mxu0 }
  0xe4   :  { %v250_v45 = vadd.f32 %v249_v43, %v44_v30  ;;  %v157_v46 = vadd.f32 %v156_v44, %v40_v31  ;;  %v251_v47 = vpop.f32.mrb[3].mxu1 }
  0xe5   :  { %276 = vst [vmem:[%s467_s3 + $0x20] sm:$0xff] %v155_v42  ;;  %v252_v48 = vadd.f32 %v251_v47, %v48_v32 }
  0xe6   :  { %278 = vst [vmem:[%s467_s3 + $0x30] sm:$0xff] %v250_v45  ;;  %277 = vst [vmem:[%s467_s3 + $0x28] sm:$0xff] %v157_v46  ;;  %v160_v49 = vpop.f32.mrb[4].mxu0 }
  0xe7   :  { %279 = vst [vmem:[%s467_s3 + $0x38] sm:$0xff] %v252_v48  ;;  %v161_v50 = vadd.f32 %v160_v49, %v36_v29  ;;  %v255_v51 = vpop.f32.mrb[4].mxu1  ;;  %v162_v52 = vpop.f32.mrb[5].mxu0 }
  0xe8   :  { %v256_v53 = vadd.f32 %v255_v51, %v44_v30  ;;  %v163_v54 = vadd.f32 %v162_v52, %v40_v31  ;;  %v257_v55 = vpop.f32.mrb[5].mxu1 }
  0xe9   :  { %280 = vst [vmem:[%s467_s3 + $0x40] sm:$0xff] %v161_v50  ;;  %v258_v56 = vadd.f32 %v257_v55, %v48_v32 }
  0xea   :  { %282 = vst [vmem:[%s467_s3 + $0x50] sm:$0xff] %v256_v53  ;;  %281 = vst [vmem:[%s467_s3 + $0x48] sm:$0xff] %v163_v54  ;;  %v166_v57 = vpop.f32.mrb[6].mxu0 }
  0xeb   :  { %283 = vst [vmem:[%s467_s3 + $0x58] sm:$0xff] %v258_v56  ;;  %v167_v58 = vadd.f32 %v166_v57, %v36_v29  ;;  %v261_v59 = vpop.f32.mrb[6].mxu1  ;;  %v168_v60 = vpop.f32.mrb[7].mxu0 }
  0xec   :  { %v262_v61 = vadd.f32 %v261_v59, %v44_v30  ;;  %v169_v62 = vadd.f32 %v168_v60, %v40_v31  ;;  %v263_v63 = vpop.f32.mrb[7].mxu1 }
  0xed   :  { %284 = vst [vmem:[%s467_s3 + $0x60] sm:$0xff] %v167_v58  ;;  %v264_v0 = vadd.f32 %v263_v63, %v48_v32 }
  0xee   :  { %286 = vst [vmem:[%s467_s3 + $0x70] sm:$0xff] %v262_v61  ;;  %285 = vst [vmem:[%s467_s3 + $0x68] sm:$0xff] %v169_v62  ;;  %v172_v1 = vpop.f32.mrb[8].mxu0 }
  0xef   :  { %287 = vst [vmem:[%s467_s3 + $0x78] sm:$0xff] %v264_v0  ;;  %v173_v2 = vadd.f32 %v172_v1, %v36_v29  ;;  %v267_v3 = vpop.f32.mrb[8].mxu1  ;;  %v174_v4 = vpop.f32.mrb[9].mxu0 }
  0xf0   :  { %v268_v5 = vadd.f32 %v267_v3, %v44_v30  ;;  %v175_v6 = vadd.f32 %v174_v4, %v40_v31  ;;  %v269_v7 = vpop.f32.mrb[9].mxu1 }
  0xf1   :  { %288 = vst [vmem:[%s467_s3 + $0x80] sm:$0xff] %v173_v2  ;;  %v270_v8 = vadd.f32 %v269_v7, %v48_v32 }
  0xf2   :  { %290 = vst [vmem:[%s467_s3 + $0x90] sm:$0xff] %v268_v5  ;;  %289 = vst [vmem:[%s467_s3 + $0x88] sm:$0xff] %v175_v6 }
  0xf3   :  { %291 = vst [vmem:[%s467_s3 + $0x98] sm:$0xff] %v270_v8 }

// kernel: seq2seq_forward.7
= control target key start
LH: loop header
LB: loop body
LE: loop exit
PB: predicated region body
PF: predicated region fallthrough
CT: control target
= control target key end

     0   :  { %v23_v0 = vlaneseq  ;;  %s989_s0 = inlined_call_operand.vmem [shape: f32[5,8,512], index: 0, kind: input, shape index: {}]   ;;  %s990_s1 = inlined_call_operand.vmem [shape: f32[128,512], index: 1, kind: input, shape index: {}]   ;;  %s991_s2 = inlined_call_operand.vmem [shape: f32[128,128], index: 2, kind: input, shape index: {}]   ;;  %s992_s3 = inlined_call_operand.vmem [shape: f32[1,128], index: 3, kind: input, shape index: {}]   ;;  %s993_s4 = inlined_call_operand.vmem [shape: f32[8,128], index: 4, kind: input, shape index: {}]   ;;  %s994_s5 = inlined_call_operand.vmem [shape: f32[8,128], index: 5, kind: input, shape index: {}]   ;;  %s995_s6 = inlined_call_operand.vmem [shape: f32[5,8,128], index: 6, kind: output, shape index: {}]  }
   0x1   :  { %v32_v1 = vld [vmem:[%s993_s4] sm:$0xff]   ;;  %s706_s4 = smov 0  }
   0x2   :  { %v33_v2 = vld [vmem:[%s994_s5] sm:$0xff]   ;;  %v687_v3 = vand.u32 127, %v23_v0 }
   0x4   :  { %vm25_vm0 = vcmp.lt.s32.totalorder %v687_v3, 10  ;;  %vm26_vm1 = vcmp.ge.s32.totalorder %v687_v3, 10  ;;  %vm27_vm2 = vcmp.lt.s32.totalorder %v687_v3, 26  ;;  %vm29_vm3 = vcmp.ge.s32.totalorder %v687_v3, 26 }
   0x5   :  { %vm693_vm4 = vmand %vm26_vm1, %vm27_vm2  ;;  %vm30_vm5 = vcmp.lt.s32.totalorder %v687_v3, 28 }
   0x6   :  { %vm698_vm6 = vmand %vm29_vm3, %vm30_vm5 }
   0x7 LB: > { %v50_v6 = vld [vmem:[%s990_s1 + $0x8] sm:$0xff]  ;;  %v49_v8 = vld [vmem:[%s990_s1] sm:$0xff]  ;;  %v643_v13 = vmov 0.0   ;;  %v52_v25 = vld [vmem:[%s990_s1 + $0x18] sm:$0xff]  ;;  %vm645_vm7 = vmmov 0   ;;  %s427_s10 = sshll.u32 %s641_s4, 5  ;;  %s641_s4 = sphi %s706_s4, %s39_s4   ;;  %v637_v1 = vphi %v32_v1, %v282_v1   ;;  %v633_v2 = vphi %v33_v2, %v280_v2  }
   0x8   : > { %v54_v7 = vld [vmem:[%s990_s1 + $0x28] sm:$0xff]  ;;  %v53_v10 = vld [vmem:[%s990_s1 + $0x20] sm:$0xff]  ;;  %177 = vmatprep.mubr.f32.mxu0 %v643_v13  ;;  %248 = vmatprep.mubr.f32.mxu1 %v643_v13  ;;  %v56_v26 = vld [vmem:[%s990_s1 + $0x38] sm:$0xff]  ;;  %s44_s13 = scalar_lea.vmem %s989_s0, %s427_s10  ;;  %s426_s16 = sshll.u32 %s641_s4, 3 }
   0x9   : > { %v480_v9 = vpack.c.bf16 %v54_v7, %v50_v6  ;;  %v58_v11 = vld [vmem:[%s990_s1 + $0x48] sm:$0xff]  ;;  %v482_v14 = vpack.c.bf16 %v53_v10, %v49_v8  ;;  %v57_v16 = vld [vmem:[%s990_s1 + $0x40] sm:$0xff]  ;;  %v512_v28 = vpack.c.bf16 %v56_v26, %v52_v25  ;;  %v51_v29 = vld [vmem:[%s990_s1 + $0x10] sm:$0xff]  ;;  %s398_s19 = scalar_lea.vmem %s995_s6, %s426_s16  ;;  %s39_s4 = sadd.s32 1, %s641_s4  }
   0xa   : > { %v62_v12 = vld [vmem:[%s990_s1 + $0x68] sm:$0xff]  ;;  %v61_v17 = vld [vmem:[%s990_s1 + $0x60] sm:$0xff]  ;;  %v55_v30 = vld [vmem:[%s990_s1 + $0x30] sm:$0xff]  ;;  %p36_p0 = scmp.ge.s32.totalorder %s39_s4, 5  }
   0xb   : > { %v484_v15 = vpack.c.bf16 %v62_v12, %v58_v11  ;;  %v66_v18 = vld [vmem:[%s990_s1 + $0x88] sm:$0xff]  ;;  %481 = vmatprep.subr.bf16.mxu0 %v480_v9  ;;  %v486_v20 = vpack.c.bf16 %v61_v17, %v57_v16  ;;  %v65_v21 = vld [vmem:[%s990_s1 + $0x80] sm:$0xff]  ;;  %v514_v31 = vpack.c.bf16 %v55_v30, %v51_v29  ;;  %513 = vmatprep.subr.bf16.mxu1 %v512_v28  ;;  %v60_v33 = vld [vmem:[%s990_s1 + $0x58] sm:$0xff] }
   0xc   : > { %v70_v19 = vld [vmem:[%s990_s1 + $0xa8] sm:$0xff]  ;;  %483 = vmatpush1.bf16.msra.mxu0 %v482_v14  ;;  %v69_v22 = vld [vmem:[%s990_s1 + $0xa0] sm:$0xff]  ;;  %v64_v34 = vld [vmem:[%s990_s1 + $0x78] sm:$0xff] }
   0xd   : > { %485 = vmatprep.subr.bf16.mxu0 %v484_v15  ;;  %v488_v23 = vpack.c.bf16 %v70_v19, %v66_v18  ;;  %v74_v24 = vld [vmem:[%s990_s1 + $0xc8] sm:$0xff]  ;;  %v490_v32 = vpack.c.bf16 %v69_v22, %v65_v21  ;;  %v59_v35 = vld [vmem:[%s990_s1 + $0x50] sm:$0xff]  ;;  %v73_v37 = vld [vmem:[%s990_s1 + $0xc0] sm:$0xff]  ;;  %515 = vmatpush1.bf16.msra.mxu1 %v514_v31  ;;  %v516_v39 = vpack.c.bf16 %v64_v34, %v60_v33 }
   0xe   : > { %v78_v27 = vld [vmem:[%s990_s1 + $0xe8] sm:$0xff]  ;;  %v77_v38 = vld [vmem:[%s990_s1 + $0xe0] sm:$0xff]  ;;  %v63_v40 = vld [vmem:[%s990_s1 + $0x70] sm:$0xff] }
   0xf   : > { %v492_v36 = vpack.c.bf16 %v78_v27, %v74_v24  ;;  %v82_v41 = vld [vmem:[%s990_s1 + $0x108] sm:$0xff]  ;;  %v518_v43 = vpack.c.bf16 %v63_v40, %v59_v35  ;;  %v68_v44 = vld [vmem:[%s990_s1 + $0x98] sm:$0xff]  ;;  %517 = vmatprep.subr.bf16.mxu1 %v516_v39  ;;  %v67_v46 = vld [vmem:[%s990_s1 + $0x90] sm:$0xff]  ;;  %v494_v48 = vpack.c.bf16 %v77_v38, %v73_v37 }
  0x10   : > { %487 = vmatpush1.bf16.msra.mxu0 %v486_v20  ;;  %v86_v42 = vld [vmem:[%s990_s1 + $0x128] sm:$0xff]  ;;  %v72_v45 = vld [vmem:[%s990_s1 + $0xb8] sm:$0xff]  ;;  %v71_v47 = vld [vmem:[%s990_s1 + $0xb0] sm:$0xff] }
  0x11   : > { %489 = vmatprep.subr.bf16.mxu0 %v488_v23  ;;  %v81_v49 = vld [vmem:[%s990_s1 + $0x100] sm:$0xff]  ;;  %v520_v51 = vpack.c.bf16 %v72_v45, %v68_v44  ;;  %v496_v52 = vpack.c.bf16 %v86_v42, %v82_v41  ;;  %519 = vmatpush1.bf16.msra.mxu1 %v518_v43  ;;  %v90_v53 = vld [vmem:[%s990_s1 + $0x148] sm:$0xff]  ;;  %v522_v54 = vpack.c.bf16 %v71_v47, %v67_v46  ;;  %v76_v55 = vld [vmem:[%s990_s1 + $0xd8] sm:$0xff] }
  0x12   : > { %v85_v50 = vld [vmem:[%s990_s1 + $0x120] sm:$0xff]  ;;  %v80_v56 = vld [vmem:[%s990_s1 + $0xf8] sm:$0xff]  ;;  %v94_v57 = vld [vmem:[%s990_s1 + $0x168] sm:$0xff] }
  0x13   : > { %521 = vmatprep.subr.bf16.mxu1 %v520_v51  ;;  %v524_v58 = vpack.c.bf16 %v80_v56, %v76_v55  ;;  %v75_v59 = vld [vmem:[%s990_s1 + $0xd0] sm:$0xff]  ;;  %v498_v61 = vpack.c.bf16 %v85_v50, %v81_v49  ;;  %v84_v62 = vld [vmem:[%s990_s1 + $0x118] sm:$0xff]  ;;  %v500_v0 = vpack.c.bf16 %v94_v57, %v90_v53  ;;  %v89_v6 = vld [vmem:[%s990_s1 + $0x140] sm:$0xff] }
  0x14   : > { %491 = vmatpush1.bf16.msra.mxu0 %v490_v32  ;;  %v79_v60 = vld [vmem:[%s990_s1 + $0xf0] sm:$0xff]  ;;  %v88_v63 = vld [vmem:[%s990_s1 + $0x138] sm:$0xff]  ;;  %v93_v7 = vld [vmem:[%s990_s1 + $0x160] sm:$0xff] }
  0x15   : > { %493 = vmatprep.subr.bf16.mxu0 %v492_v36  ;;  %523 = vmatpush1.bf16.msra.mxu1 %v522_v54  ;;  %v98_v8 = vld [vmem:[%s990_s1 + $0x188] sm:$0xff]  ;;  %v526_v9 = vpack.c.bf16 %v79_v60, %v75_v59  ;;  %v528_v11 = vpack.c.bf16 %v88_v63, %v84_v62  ;;  %v83_v12 = vld [vmem:[%s990_s1 + $0x110] sm:$0xff]  ;;  %v92_v15 = vld [vmem:[%s990_s1 + $0x158] sm:$0xff]  ;;  %v502_v17 = vpack.c.bf16 %v93_v7, %v89_v6 }
  0x16   : > { %v102_v10 = vld [vmem:[%s990_s1 + $0x1a8] sm:$0xff]  ;;  %525 = vmatprep.subr.bf16.mxu1 %v524_v58  ;;  %v87_v14 = vld [vmem:[%s990_s1 + $0x130] sm:$0xff]  ;;  %v96_v16 = vld [vmem:[%s990_s1 + $0x178] sm:$0xff] }
  0x17   : > { %v504_v18 = vpack.c.bf16 %v102_v10, %v98_v8  ;;  %v97_v19 = vld [vmem:[%s990_s1 + $0x180] sm:$0xff]  ;;  %v106_v21 = vld [vmem:[%s990_s1 + $0x1c8] sm:$0xff]  ;;  %v530_v22 = vpack.c.bf16 %v87_v14, %v83_v12  ;;  %v532_v24 = vpack.c.bf16 %v96_v16, %v92_v15  ;;  %v91_v25 = vld [vmem:[%s990_s1 + $0x150] sm:$0xff] }
  0x18   : > { %495 = vmatpush1.bf16.msra.mxu0 %v494_v48  ;;  %v101_v20 = vld [vmem:[%s990_s1 + $0x1a0] sm:$0xff]  ;;  %v110_v23 = vld [vmem:[%s990_s1 + $0x1e8] sm:$0xff]  ;;  %v95_v26 = vld [vmem:[%s990_s1 + $0x170] sm:$0xff]  ;;  %v644_v48 = vmov 0.0|0.0  }
  0x19   : > { %497 = vmatprep.subr.bf16.mxu0 %v496_v52  ;;  %527 = vmatpush1.bf16.msra.mxu1 %v526_v9  ;;  %v100_v27 = vld [vmem:[%s990_s1 + $0x198] sm:$0xff]  ;;  %v506_v29 = vpack.c.bf16 %v101_v20, %v97_v19  ;;  %v508_v30 = vpack.c.bf16 %v110_v23, %v106_v21  ;;  %v105_v31 = vld [vmem:[%s990_s1 + $0x1c0] sm:$0xff]  ;;  %v534_v33 = vpack.c.bf16 %v95_v26, %v91_v25  ;;  %v99_v35 = vld [vmem:[%s990_s1 + $0x190] sm:$0xff] }
  0x1a   : > { %529 = vmatprep.subr.bf16.mxu1 %v528_v11  ;;  %v104_v28 = vld [vmem:[%s990_s1 + $0x1b8] sm:$0xff]  ;;  %v109_v32 = vld [vmem:[%s990_s1 + $0x1e0] sm:$0xff]  ;;  %v103_v36 = vld [vmem:[%s990_s1 + $0x1b0] sm:$0xff] }
  0x1b   : > { %v536_v34 = vpack.c.bf16 %v104_v28, %v100_v27  ;;  %v108_v37 = vld [vmem:[%s990_s1 + $0x1d8] sm:$0xff]  ;;  %v510_v39 = vpack.c.bf16 %v109_v32, %v105_v31  ;;  %v538_v40 = vpack.c.bf16 %v103_v36, %v99_v35  ;;  %v107_v42 = vld [vmem:[%s990_s1 + $0x1d0] sm:$0xff]  ;;  %v283_v45 = vld [vmem:[%s991_s2] sm:$0xff] }
  0x1c   : > { %499 = vmatpush1.bf16.msra.mxu0 %v498_v61  ;;  %v112_v38 = vld [vmem:[%s990_s1 + $0x1f8] sm:$0xff]  ;;  %v111_v43 = vld [vmem:[%s990_s1 + $0x1f0] sm:$0xff]  ;;  %v284_v46 = vld [vmem:[%s991_s2 + $0x8] sm:$0xff] }
  0x1d   : > { %501 = vmatprep.subr.bf16.mxu0 %v500_v0  ;;  %531 = vmatpush1.bf16.msra.mxu1 %v530_v22  ;;  %v540_v41 = vpack.c.bf16 %v112_v38, %v108_v37  ;;  %v542_v44 = vpack.c.bf16 %v111_v43, %v107_v42  ;;  %v545_v47 = vpack.c.bf16 %v284_v46, %v283_v45  ;;  %v285_v49 = vld [vmem:[%s991_s2 + $0x10] sm:$0xff]  ;;  %v287_v51 = vld [vmem:[%s991_s2 + $0x20] sm:$0xff]  ;;  %v288_v52 = vld [vmem:[%s991_s2 + $0x28] sm:$0xff] }
  0x1e   : > { %533 = vmatprep.subr.bf16.mxu1 %v532_v24  ;;  %v551_v53 = vpack.c.bf16 %v288_v52, %v287_v51  ;;  %v289_v54 = vld [vmem:[%s991_s2 + $0x30] sm:$0xff]  ;;  %v290_v55 = vld [vmem:[%s991_s2 + $0x38] sm:$0xff]  ;;  %v291_v57 = vld [vmem:[%s991_s2 + $0x40] sm:$0xff] }
  0x1f   : > { %v554_v56 = vpack.c.bf16 %v290_v55, %v289_v54  ;;  %v292_v58 = vld [vmem:[%s991_s2 + $0x48] sm:$0xff]  ;;  %v293_v60 = vld [vmem:[%s991_s2 + $0x50] sm:$0xff]  ;;  %v294_v61 = vld [vmem:[%s991_s2 + $0x58] sm:$0xff] }
  0x20   : > { %503 = vmatpush1.bf16.msra.mxu0 %v502_v17  ;;  %v557_v59 = vpack.c.bf16 %v292_v58, %v291_v57  ;;  %v560_v62 = vpack.c.bf16 %v294_v61, %v293_v60  ;;  %v295_v63 = vld [vmem:[%s991_s2 + $0x60] sm:$0xff]  ;;  %v296_v0 = vld [vmem:[%s991_s2 + $0x68] sm:$0xff]  ;;  %v297_v7 = vld [vmem:[%s991_s2 + $0x70] sm:$0xff] }
  0x21   : > { %505 = vmatprep.subr.bf16.mxu0 %v504_v18  ;;  %535 = vmatpush1.bf16.msra.mxu1 %v534_v33  ;;  %v563_v6 = vpack.c.bf16 %v296_v0, %v295_v63  ;;  %v298_v8 = vld [vmem:[%s991_s2 + $0x78] sm:$0xff]  ;;  %v46_v10 = vld [vmem:[%s44_s13 + $0x8] sm:$0xff]  ;;  %v47_v22 = vld [vmem:[%s44_s13 + $0x10] sm:$0xff] }
  0x22   : > { %537 = vmatprep.subr.bf16.mxu1 %v536_v34  ;;  %v566_v9 = vpack.c.bf16 %v298_v8, %v297_v7  ;;  %v48_v18 = vld [vmem:[%s44_s13 + $0x18] sm:$0xff]  ;;  %v424_v38 = vld [vmem:[%s992_s3] ss:$0 sm:$0xff] }
  0x24   : > { %507 = vmatpush1.bf16.msra.mxu0 %v506_v29 }
  0x25   : > { %509 = vmatprep.subr.bf16.mxu0 %v508_v30  ;;  %539 = vmatpush1.bf16.msra.mxu1 %v538_v40 }
  0x26   : > { %541 = vmatprep.subr.bf16.mxu1 %v540_v41 }
  0x28   : > { %511 = vmatpush1.bf16.msra.mxu0 %v510_v39 }
  0x29   : > { %543 = vmatpush1.bf16.msra.mxu1 %v542_v44  ;;  %544 = vmatprep.subr.bf16.mxu0 %v644_v48 }
  0x2b   : > { %178 = vmatmul.mubr.f32.vlgmr.msra.gmra.mrb[0].mxu0 %v637_v1 }
  0x2c   : > { %249 = vmatmul.mubr.f32.vlgmr.msra.gmra.mrb[0].mxu1 %v637_v1  ;;  %546 = vmatpush3.bf16.msra.mxu0 %v545_v47  ;;  %v286_v1 = vld [vmem:[%s991_s2 + $0x18] sm:$0xff] }
  0x2d   : > { %547 = vmatprep.subr.bf16.mxu0 %v644_v48  ;;  %v548_v50 = vpack.c.bf16 %v286_v1, %v285_v49  ;;  %477 = vmatprep.mubr.msk.f32.mxu0 %vm645_vm7, %v643_v13  ;;  %v45_v13 = vld [vmem:[%s44_s13] sm:$0xff] }
  0x30   : > { %549 = vmatpush3.bf16.msra.mxu0 %v548_v50 }
  0x31   : > { %550 = vmatprep.subr.bf16.mxu0 %v644_v48 }
  0x34   : > { %552 = vmatpush3.bf16.msra.mxu0 %v551_v53 }
  0x35   : > { %553 = vmatprep.subr.bf16.mxu0 %v644_v48 }
  0x38   : > { %555 = vmatpush3.bf16.msra.mxu0 %v554_v56 }
  0x39   : > { %556 = vmatprep.subr.bf16.mxu0 %v644_v48 }
  0x3c   : > { %558 = vmatpush3.bf16.msra.mxu0 %v557_v59 }
  0x3d   : > { %559 = vmatprep.subr.bf16.mxu0 %v644_v48 }
  0x40   : > { %561 = vmatpush3.bf16.msra.mxu0 %v560_v62 }
  0x41   : > { %562 = vmatprep.subr.bf16.mxu0 %v644_v48 }
  0x44   : > { %564 = vmatpush3.bf16.msra.mxu0 %v563_v6 }
  0x45   : > { %565 = vmatprep.subr.bf16.mxu0 %v644_v48 }
  0x48   : > { %567 = vmatpush3.bf16.msra.mxu0 %v566_v9 }
  0xfe   : > { %v179_v11 = vpop.f32.mrb[0].mxu0 }
  0xff   : > { %v255_v12 = vadd.f32 %v179_v11, %v45_v13  ;;  %v181_v14 = vpop.f32.mrb[1].mxu0  ;;  %v250_v19 = vpop.f32.mrb[0].mxu1 }
 0x100   : > { %v256_v15 = vadd.f32 %v181_v14, %v46_v10  ;;  %v252_v20 = vpop.f32.mrb[1].mxu1  ;;  %v257_v24 = vadd.f32 %v250_v19, %v47_v22 }
 0x101   : > { %v421_v16 = vmul.f32 -1.442695, %v255_v12  ;;  %v258_v21 = vadd.f32 %v252_v20, %v48_v18 }
 0x102   : > { %v422_v17 = vmul.f32 -1.442695, %v256_v15 }
 0x103   : > { %595 = vpow2.f32 %v421_v16  ;;  %v423_v23 = vmul.f32 -1.442695, %v258_v21 }
 0x104   : > { %597 = vpow2.f32 %v422_v17 }
 0x105   : > { %599 = vpow2.f32 %v423_v23 }
 0x106   : > { %601 = vtanh.f32 %v257_v24 }
 0x10d   : > { %v596_v25 = vpop.eup %595 }
 0x10e   : > { %v598_v26 = vpop.eup %597  ;;  %v262_v27 = vadd.f32 1.0, %v596_v25 }
 0x10f   : > { %v268_v28 = vadd.f32 1.0, %v598_v26  ;;  %v600_v29 = vpop.eup %599 }
 0x110   : > { %603 = vrcp.f32 %v262_v27  ;;  %v602_v30 = vpop.eup %601  ;;  %v275_v32 = vadd.f32 1.0, %v600_v29 }
 0x111   : > { %605 = vrcp.f32 %v268_v28 }
 0x112   : > { %607 = vrcp.f32 %v275_v32 }
 0x11a   : > { %v604_v31 = vpop.eup %603 }
 0x11b   : > { %v606_v33 = vpop.eup %605  ;;  %v279_v34 = vmul.f32 %v604_v31, %v602_v30 }
 0x11c   : > { %v278_v35 = vmul.f32 %v633_v2, %v606_v33  ;;  %v608_v36 = vpop.eup %607 }
 0x11e   : > { %v280_v2 = vadd.f32 %v279_v34, %v278_v35  }
 0x120   : > { %609 = vtanh.f32 %v280_v2 }
 0x12a   : > { %v610_v37 = vpop.eup %609 }
 0x12b   : > { %v282_v1 = vmul.f32 %v610_v37, %v608_v36  }
 0x12d   : > { %478 = vmatmul.mubr.f32.vlgmr.msra.gmra.mrb[2].mxu0 %v282_v1 }
 0x200   : > { %v372_v39 = vpop.f32.mrb[2].mxu0 }
 0x201   : > { %v373_v40 = vadd.f32 %v424_v38, %v372_v39  ;;  %v479_v41 = vpop.f32.mrb[3].mxu0 }
 0x203   : > { %v376_v42 = vsel %vm693_vm4, %v373_v40, -1e+30  ;;  %v425_v47 = vmul.f32 -1.442695, %v373_v40 }
 0x204   : > { %377 = vmax.xlane.f32.xlu0 %v376_v42 }
 0x291   : > { %v378_v43 = vpop.xlane.xlu0 %377 }
 0x292   : > { %v379_v44 = vsub.f32 %v376_v42, %v378_v43 }
 0x294   : > { %v380_v45 = vmul.f32 1.442695, %v379_v44 }
 0x296   : > { %611 = vpow2.f32 %v380_v45 }
 0x297   : > { %613 = vpow2.f32 %v425_v47 }
 0x2a0   : > { %v612_v46 = vpop.eup %611 }
 0x2a1   : > { %382 = vadd.xlane.f32.xlu0 %v612_v46  ;;  %v614_v48 = vpop.eup %613 }
 0x2a2   : > { %v391_v49 = vadd.f32 1.0, %v614_v48 }
 0x32e   : > { %v383_v50 = vpop.xlane.xlu0 %382 }
 0x32f   : > { %615 = vlog2.f32 %v383_v50 }
 0x330   : > { %617 = vrcp.f32 %v391_v49 }
 0x339   : > { %v616_v51 = vpop.eup %615 }
 0x33a   : > { %v385_v52 = vmul.f32 0.6931472, %v616_v51  ;;  %v618_v53 = vpop.eup %617 }
 0x33b   : > { %v394_v56 = vsel %vm698_vm6, %v618_v53, 0.0 }
 0x33c   : > { %v386_v54 = vadd.f32 %v385_v52, %v378_v43  ;;  %38 = sbr.rel (!%p36_p0) target bundleno = 7 (0x7), region = 53 }
 0x33e   : > { %v387_v55 = vsub.f32 %v373_v40, %v386_v54 }
 0x340   : > { %v395_v57 = vsel %vm693_vm4, %v387_v55, %v394_v56 }
 0x341   : > { %v396_v58 = vsel %vm25_vm0, %v373_v40, %v395_v57 }
 0x342   : > { %399 = vst [vmem:[%s398_s19] sm:$0xff] %v396_v58 }

</bundles_post_ra>
